<compile_context>
chip_gen: v7x
topology: tpu7x:2x2x1
jax: 0.10.0
libtpu: 0.0.40
codegen_flags: <defaults>
</compile_context>

<pallas_src>
import functools
import math

import jax
import jax.numpy as jnp
from jax import lax
from jax.experimental import pallas as pl
from jax.experimental.pallas import tpu as pltpu

# Numerically equivalent to PyTorch's -inf causal mask (exp underflows to exactly 0).
NEG_INF = -1e30


# -----------------------------------------------------------------------------
# Small in-kernel helpers
# -----------------------------------------------------------------------------
def _softmax(s):
    m = jnp.max(s, axis=-1, keepdims=True)
    e = jnp.exp(s - m)
    # EUP reciprocal instead of a VPU divide sequence.
    return e * pl.reciprocal(jnp.sum(e, axis=-1, keepdims=True), approx=True)


def _layer_norm(v, g, b, eps=1e-5):
    mu = jnp.mean(v, axis=-1, keepdims=True)
    var = jnp.mean((v - mu) ** 2, axis=-1, keepdims=True)
    return (v - mu) * lax.rsqrt(var + eps) * g + b


# -----------------------------------------------------------------------------
# Fused Pallas kernel: all decoder layers + fc_out in a single grid-less call
# -----------------------------------------------------------------------------
def _fused_decoder_kernel(
    x_ref,            # (N, D)      token rows, r = s*B + b
    mask_ref,         # (N, N)      causal + batch-block additive mask (precomputed, const)
    wqkv_ref,         # (L, D, 3D)  self-attn fused QKV weight (stacked over layers)
    bqkv_ref,         # (L, 1, 3D)  self-attn fused QKV bias
    wo_ref,           # (L, D, D)   self-attn output projection
    w1_ref, b1_ref,   # (L, D, F), (L, 1, F)   feed-forward 1
    w2_ref,           # (L, F, D)              feed-forward 2
    rows_ref,         # (L, 9, D)   packed (1, D) rows per layer
    wout_ref,         # (D, Vpad)   fc_out weight, vocab padded to lane width
    bout_ref,         # (1, Vpad)   fc_out bias
    out_ref,          # (N, Vpad)
    *, num_layers, nhead, head_dim):
    D = nhead * head_dim
    scale = 1.0 / math.sqrt(head_dim)

    x = x_ref[...]                                          # (N, D) activation, stays resident
    mask = mask_ref[...]                                    # (N, N) built once, reused by all layers

    # Static unroll over layers: every weight slab is already resident in VMEM.
    for l in range(num_layers):
        wqkv = wqkv_ref[l]                                  # (D, 3D)
        bqkv = bqkv_ref[l]                                  # (1, 3D)
        wo = wo_ref[l]                                      # (D, D)
        w1 = w1_ref[l]                                      # (D, F)
        b1 = b1_ref[l]                                      # (1, F)
        w2 = w2_ref[l]                                      # (F, D)
        rows = rows_ref[l]                                  # (9, D)
        b_sa_o = rows[0:1]
        ln1_g, ln1_b = rows[1:2], rows[2:3]
        ca_const = rows[3:4]    # zero-memory cross-attention output (exact constant row)
        ln2_g, ln2_b = rows[4:5], rows[5:6]
        b_ff2 = rows[6:7]
        ln3_g, ln3_b = rows[7:8], rows[8:9]

        # ---- masked multi-head self-attention (post-norm, dropout = identity) ----
        qkv = jnp.dot(x, wqkv, preferred_element_type=jnp.float32) + bqkv   # (N, 3D)
        sa = None
        for h in range(nhead):                              # static unroll; tiny per-head dots
            q_h = qkv[:, h * head_dim:(h + 1) * head_dim]
            k_h = qkv[:, D + h * head_dim:D + (h + 1) * head_dim]
            v_h = qkv[:, 2 * D + h * head_dim:2 * D + (h + 1) * head_dim]
            s = lax.dot_general(q_h, k_h, (((1,), (1,)), ((), ())),
                                preferred_element_type=jnp.float32) * scale + mask
            p = _softmax(s)
            ctx_h = jnp.dot(p, v_h, preferred_element_type=jnp.float32)     # (N, hd)
            # Per-head accumulation against sublane-aligned W_o row slab (no lane concat).
            contrib = jnp.dot(ctx_h, wo[h * head_dim:(h + 1) * head_dim, :],
                              preferred_element_type=jnp.float32)           # (N, D)
            sa = contrib if sa is None else sa + contrib
        x1 = _layer_norm(x + sa + b_sa_o, ln1_g, ln1_b)

        # ---- cross-attention vs zero memory of length 1 == add a constant row ----
        x2 = _layer_norm(x1 + ca_const, ln2_g, ln2_b)

        # ---- feed-forward (ReLU) ----
        h1 = jnp.maximum(jnp.dot(x2, w1, preferred_element_type=jnp.float32) + b1, 0.0)
        ff = jnp.dot(h1, w2, preferred_element_type=jnp.float32) + b_ff2
        x = _layer_norm(x2 + ff, ln3_g, ln3_b)

    # ---- final fc_out projection (lane-dense, padded vocab) ----
    out_ref[...] = (jnp.dot(x, wout_ref[...], preferred_element_type=jnp.float32)
                    + bout_ref[...])


def _fused_forward_pallas(x2d, mask, w_qkv, b_qkv, w_o, w1, b1, w2, rows, w_out, b_out,
                          *, nhead):
    N, D = x2d.shape
    L, _, F = w1.shape
    Vpad = w_out.shape[1]
    hd = D // nhead

    kernel = functools.partial(_fused_decoder_kernel,
                               num_layers=L, nhead=nhead, head_dim=hd)

    # Advisory cost estimate so XLA schedules the call sensibly among neighbors.
    flops = int(
        L * (2 * N * D * (3 * D)                             # fused QKV projection
             + nhead * (2 * N * N * hd                       # QK^T
                        + 2 * N * N * hd                     # PV
                        + 2 * N * hd * D)                    # per-head output projection
             + 2 * N * D * F                                 # FF1
             + 2 * N * F * D)                                # FF2
        + 2 * N * D * Vpad)                                  # fc_out
    transcendentals = int(L * (nhead * N * N + 6 * N))
    bytes_accessed = int(4 * (x2d.size + mask.size + w_qkv.size + b_qkv.size + w_o.size
                              + w1.size + b1.size + w2.size + rows.size
                              + w_out.size + b_out.size + N * Vpad))

    # Grid-less call: every operand is a whole-array VMEM-resident block (< 0.5 MiB total),
    # the activation stays resident across layers, and there is no per-grid-step pipeline
    # overhead or per-layer DMA wait.  vmem_limit_bytes set explicitly for portability
    # across v5e (16 MiB scoped default) / v6e / v7x.
    return pl.pallas_call(
        kernel,
        out_shape=jax.ShapeDtypeStruct((N, Vpad), jnp.float32),
        compiler_params=pltpu.CompilerParams(vmem_limit_bytes=32 * 1024 * 1024),
        cost_estimate=pl.CostEstimate(flops=flops, transcendentals=transcendentals,
                                      bytes_accessed=bytes_accessed),
    )(x2d, mask, w_qkv, b_qkv, w_o, w1, b1, w2, rows, w_out, b_out)


# -----------------------------------------------------------------------------
# Plain-JAX glue: parameters, positional encoding, full forward
# -----------------------------------------------------------------------------
def _positional_encoding(max_len, d_model):
    pos = jnp.arange(max_len, dtype=jnp.float32)[:, None]
    div = jnp.exp(jnp.arange(0, d_model, 2, dtype=jnp.float32) * (-math.log(10000.0) / d_model))
    pe = jnp.zeros((max_len, d_model), jnp.float32)
    pe = pe.at[:, 0::2].set(jnp.sin(pos * div))
    pe = pe.at[:, 1::2].set(jnp.cos(pos * div))
    return pe


def init_params(key, vocab_size, d_model, nhead, num_layers, dim_feedforward, max_len=64):
    keys = jax.random.split(key, 3 + num_layers)
    D, F = d_model, dim_feedforward
    params = {
        "embedding": jax.random.normal(keys[0], (vocab_size, D), jnp.float32),
        "pe": _positional_encoding(max_len, D),
        "w_out": 0.02 * jax.random.normal(keys[1], (D, vocab_size), jnp.float32),
        "b_out": 0.02 * jax.random.normal(keys[2], (1, vocab_size), jnp.float32),
        "layers": [],
    }
    for l in range(num_layers):
        k = jax.random.split(keys[3 + l], 16)
        lp = {
            "w_sa_qkv": 0.02 * jax.random.normal(k[0], (D, 3 * D), jnp.float32),
            "b_sa_qkv": 0.02 * jax.random.normal(k[1], (1, 3 * D), jnp.float32),
            "w_sa_o":   0.02 * jax.random.normal(k[2], (D, D), jnp.float32),
            "b_sa_o":   0.02 * jax.random.normal(k[3], (1, D), jnp.float32),
            "w_ca_qkv": 0.02 * jax.random.normal(k[4], (D, 3 * D), jnp.float32),
            "b_ca_qkv": 0.02 * jax.random.normal(k[5], (1, 3 * D), jnp.float32),
            "w_ca_o":   0.02 * jax.random.normal(k[6], (D, D), jnp.float32),
            "b_ca_o":   0.02 * jax.random.normal(k[7], (1, D), jnp.float32),
            "ln1_g": 1.0 + 0.01 * jax.random.normal(k[8], (1, D), jnp.float32),
            "ln1_b": 0.01 * jax.random.normal(k[9], (1, D), jnp.float32),
            "ln2_g": 1.0 + 0.01 * jax.random.normal(k[10], (1, D), jnp.float32),
            "ln2_b": 0.01 * jax.random.normal(k[11], (1, D), jnp.float32),
            "ln3_g": 1.0 + 0.01 * jax.random.normal(k[12], (1, D), jnp.float32),
            "ln3_b": 0.01 * jax.random.normal(k[13], (1, D), jnp.float32),
            "w_ff1": 0.02 * jax.random.normal(k[14], (D, F), jnp.float32),
            "b_ff1": 0.02 * jax.random.normal(jax.random.fold_in(k[14], 1), (1, F), jnp.float32),
            "w_ff2": 0.02 * jax.random.normal(k[15], (F, D), jnp.float32),
            "b_ff2": 0.02 * jax.random.normal(jax.random.fold_in(k[15], 1), (1, D), jnp.float32),
        }
        params["layers"].append(lp)
    return params


def music_transformer2_forward(params, target, nhead, d_model):
    """target: (tgt_len, batch) int tokens -> logits (tgt_len, batch, vocab)."""
    S, B = target.shape
    D = d_model
    N = S * B
    x = params["embedding"][target] * math.sqrt(d_model)        # (S, B, D) embedding gather (JAX glue)
    # NOTE: reproduces the original module verbatim: pe is sliced with x.shape[-2]
    # (== batch_size), i.e. positions are indexed by the *batch* dimension and
    # broadcast over the sequence.
    x = x + params["pe"][None, :B, :]                            # (1, B, D) broadcast over seq
    x2d = x.reshape(N, D)                                        # row r = s*B + b (no transpose)

    # Causal + batch-block additive mask, built ONCE in JAX and passed as a ~1 KB constant
    # (hoisted out of the kernel per the performance review).
    r = jnp.arange(N)
    visible = ((r[:, None] % B) == (r[None, :] % B)) & ((r[None, :] // B) <= (r[:, None] // B))
    mask = jnp.where(visible, 0.0, NEG_INF).astype(jnp.float32)  # (N, N)

    # Stack per-layer weights along a leading layer axis (all resident inside the kernel).
    layers = params["layers"]
    w_qkv = jnp.stack([lp["w_sa_qkv"] for lp in layers])         # (L, D, 3D)
    b_qkv = jnp.stack([lp["b_sa_qkv"] for lp in layers])         # (L, 1, 3D)
    w_o = jnp.stack([lp["w_sa_o"] for lp in layers])             # (L, D, D)
    w1 = jnp.stack([lp["w_ff1"] for lp in layers])               # (L, D, F)
    b1 = jnp.stack([lp["b_ff1"] for lp in layers])               # (L, 1, F)
    w2 = jnp.stack([lp["w_ff2"] for lp in layers])               # (L, F, D)
    # Packed (1, D) rows: [b_sa_o, ln1_g, ln1_b, ca_const, ln2_g, ln2_b, b_ff2, ln3_g, ln3_b].
    # ca_const is the EXACT cross-attention output for an all-zero, length-1 memory:
    #   softmax over a singleton key == 1  =>  ca = b_v @ W_o + b_o.
    rows = jnp.stack([
        jnp.concatenate([
            lp["b_sa_o"],
            lp["ln1_g"], lp["ln1_b"],
            lp["b_ca_qkv"][:, 2 * D:] @ lp["w_ca_o"] + lp["b_ca_o"],
            lp["ln2_g"], lp["ln2_b"],
            lp["b_ff2"],
            lp["ln3_g"], lp["ln3_b"],
        ], axis=0)
        for lp in layers
    ])                                                           # (L, 9, D)

    V = params["w_out"].shape[1]
    Vpad = ((V + 127) // 128) * 128                              # lane-dense fc_out output
    w_out = jnp.pad(params["w_out"], ((0, 0), (0, Vpad - V)))
    b_out = jnp.pad(params["b_out"], ((0, 0), (0, Vpad - V)))

    logits_p = _fused_forward_pallas(x2d, mask, w_qkv, b_qkv, w_o, w1, b1, w2, rows,
                                     w_out, b_out, nhead=nhead)
    return logits_p.reshape(S, B, Vpad)[:, :, :V]                # (tgt_len, batch, vocab)


# -----------------------------------------------------------------------------
# Pure-JAX reference (full math, including the explicit zero-memory cross-attn)
# -----------------------------------------------------------------------------
def _ref_layer_one(x, mask, mem, p, nhead):
    D = x.shape[-1]
    hd = D // nhead
    scale = 1.0 / math.sqrt(hd)

    def attn(q_in, kv_in, w_qkv, b_qkv, w_o, b_o, m):
        q = q_in @ w_qkv[:, :D] + b_qkv[:, :D]
        k = kv_in @ w_qkv[:, D:2 * D] + b_qkv[:, D:2 * D]
        v = kv_in @ w_qkv[:, 2 * D:] + b_qkv[:, 2 * D:]
        out = jnp.zeros_like(q_in)
        for h in range(nhead):
            sl = slice(h * hd, (h + 1) * hd)
            s = q[:, sl] @ k[:, sl].T * scale
            if m is not None:
                s = s + m
            pr = jax.nn.softmax(s, axis=-1)
            out = out + (pr @ v[:, sl]) @ w_o[sl, :]
        return out + b_o

    def ln(v, g, b):
        mu = v.mean(-1, keepdims=True)
        var = ((v - mu) ** 2).mean(-1, keepdims=True)
        return (v - mu) * lax.rsqrt(var + 1e-5) * g + b

    x1 = ln(x + attn(x, x, p["w_sa_qkv"], p["b_sa_qkv"], p["w_sa_o"], p["b_sa_o"], mask),
            p["ln1_g"], p["ln1_b"])
    x2 = ln(x1 + attn(x1, mem, p["w_ca_qkv"], p["b_ca_qkv"], p["w_ca_o"], p["b_ca_o"], None),
            p["ln2_g"], p["ln2_b"])
    x3 = ln(x2 + (jnp.maximum(x2 @ p["w_ff1"] + p["b_ff1"], 0.0) @ p["w_ff2"] + p["b_ff2"]),
            p["ln3_g"], p["ln3_b"])
    return x3


def reference_forward(params, target, nhead, d_model):
    S, B = target.shape
    x = params["embedding"][target] * math.sqrt(d_model)
    x = x + params["pe"][None, :B, :]
    x = jnp.transpose(x, (1, 0, 2))                              # (B, S, D)
    i = jnp.arange(S)
    mask = jnp.where(i[None, :] <= i[:, None], 0.0, NEG_INF).astype(jnp.float32)
    mem = jnp.zeros((B, 1, d_model), jnp.float32)
    for lp in params["layers"]:
        x = jax.vmap(lambda xb, mb, lp=lp: _ref_layer_one(xb, mask, mb, lp, nhead))(x, mem)
    V = params["w_out"].shape[1]
    logits = x.reshape(B * S, d_model) @ params["w_out"] + params["b_out"]
    return logits.reshape(B, S, V).transpose(1, 0, 2)            # (S, B, V)


# -----------------------------------------------------------------------------
if __name__ == "__main__":
    VOCAB, D_MODEL, NHEAD, NUM_LAYERS, D_FF = 96, 64, 4, 2, 128
    TGT_LEN, BATCH = 8, 2

    key = jax.random.PRNGKey(0)
    pkey, tkey = jax.random.split(key)
    params = init_params(pkey, VOCAB, D_MODEL, NHEAD, NUM_LAYERS, D_FF)
    target = jax.random.randint(tkey, (TGT_LEN, BATCH), 0, VOCAB, dtype=jnp.int32)

    fwd = jax.jit(functools.partial(music_transformer2_forward, nhead=NHEAD, d_model=D_MODEL))
    out = jax.block_until_ready(fwd(params, target))
    assert out.shape == (TGT_LEN, BATCH, VOCAB), out.shape

    ref = jax.block_until_ready(reference_forward(params, target, NHEAD, D_MODEL))
    max_err = float(jnp.max(jnp.abs(out - ref)))
    # Tolerance accounts for default (non-"highest") MXU matmul precision on both paths
    # and the approx EUP reciprocal in softmax.
    if not bool(jnp.allclose(out, ref, atol=2e-2, rtol=2e-2)):
        raise AssertionError(f"Pallas output mismatch vs reference, max abs err = {max_err}")

    print("KERNEL_OK")
</pallas_src>

<mosaic_0001>
module attributes {stable_mosaic.version = 11 : i64} {
  func.func @_fused_decoder_kernel(%arg0: memref<16x64xf32, #tpu.memory_space<vmem>>, %arg1: memref<16x16xf32, #tpu.memory_space<vmem>>, %arg2: memref<2x64x192xf32, #tpu.memory_space<vmem>>, %arg3: memref<2x1x192xf32, #tpu.memory_space<vmem>>, %arg4: memref<2x64x64xf32, #tpu.memory_space<vmem>>, %arg5: memref<2x64x128xf32, #tpu.memory_space<vmem>>, %arg6: memref<2x1x128xf32, #tpu.memory_space<vmem>>, %arg7: memref<2x128x64xf32, #tpu.memory_space<vmem>>, %arg8: memref<2x9x64xf32, #tpu.memory_space<vmem>>, %arg9: memref<64x128xf32, #tpu.memory_space<vmem>>, %arg10: memref<1x128xf32, #tpu.memory_space<vmem>>, %arg11: memref<16x128xf32, #tpu.memory_space<vmem>>) attributes {dimension_semantics = [], scalar_prefetch = 0 : i64, scratch_operands = 0 : i64, tpu.core_type = #tpu.core_type<tc>} {
    %c0 = arith.constant 0 : index
    %c0_0 = arith.constant 0 : index
    %0 = vector.load %arg0[%c0, %c0_0] : memref<16x64xf32, #tpu.memory_space<vmem>>, vector<16x64xf32>
    %c0_1 = arith.constant 0 : index
    %c0_2 = arith.constant 0 : index
    %1 = vector.load %arg1[%c0_1, %c0_2] : memref<16x16xf32, #tpu.memory_space<vmem>>, vector<16x16xf32>
    %c0_3 = arith.constant 0 : index
    %c0_4 = arith.constant 0 : index
    %c0_5 = arith.constant 0 : index
    %2 = vector.load %arg2[%c0_3, %c0_4, %c0_5] : memref<2x64x192xf32, #tpu.memory_space<vmem>>, vector<1x64x192xf32>
    %3 = vector.shape_cast %2 : vector<1x64x192xf32> to vector<64x192xf32>
    %c0_6 = arith.constant 0 : index
    %c0_7 = arith.constant 0 : index
    %c0_8 = arith.constant 0 : index
    %4 = vector.load %arg3[%c0_6, %c0_7, %c0_8] : memref<2x1x192xf32, #tpu.memory_space<vmem>>, vector<1x1x192xf32>
    %5 = vector.shape_cast %4 : vector<1x1x192xf32> to vector<1x192xf32>
    %c0_9 = arith.constant 0 : index
    %c0_10 = arith.constant 0 : index
    %c0_11 = arith.constant 0 : index
    %6 = vector.load %arg4[%c0_9, %c0_10, %c0_11] : memref<2x64x64xf32, #tpu.memory_space<vmem>>, vector<1x64x64xf32>
    %7 = vector.shape_cast %6 : vector<1x64x64xf32> to vector<64x64xf32>
    %c0_12 = arith.constant 0 : index
    %c0_13 = arith.constant 0 : index
    %c0_14 = arith.constant 0 : index
    %8 = vector.load %arg5[%c0_12, %c0_13, %c0_14] : memref<2x64x128xf32, #tpu.memory_space<vmem>>, vector<1x64x128xf32>
    %9 = vector.shape_cast %8 : vector<1x64x128xf32> to vector<64x128xf32>
    %c0_15 = arith.constant 0 : index
    %c0_16 = arith.constant 0 : index
    %c0_17 = arith.constant 0 : index
    %10 = vector.load %arg6[%c0_15, %c0_16, %c0_17] : memref<2x1x128xf32, #tpu.memory_space<vmem>>, vector<1x1x128xf32>
    %11 = vector.shape_cast %10 : vector<1x1x128xf32> to vector<1x128xf32>
    %c0_18 = arith.constant 0 : index
    %c0_19 = arith.constant 0 : index
    %c0_20 = arith.constant 0 : index
    %12 = vector.load %arg7[%c0_18, %c0_19, %c0_20] : memref<2x128x64xf32, #tpu.memory_space<vmem>>, vector<1x128x64xf32>
    %13 = vector.shape_cast %12 : vector<1x128x64xf32> to vector<128x64xf32>
    %c0_21 = arith.constant 0 : index
    %c0_22 = arith.constant 0 : index
    %c0_23 = arith.constant 0 : index
    %14 = vector.load %arg8[%c0_21, %c0_22, %c0_23] : memref<2x9x64xf32, #tpu.memory_space<vmem>>, vector<1x9x64xf32>
    %15 = vector.shape_cast %14 : vector<1x9x64xf32> to vector<9x64xf32>
    %16 = vector.extract_strided_slice %15 {offsets = [0, 0], sizes = [1, 64], strides = [1, 1]} : vector<9x64xf32> to vector<1x64xf32>
    %17 = vector.extract_strided_slice %15 {offsets = [1, 0], sizes = [1, 64], strides = [1, 1]} : vector<9x64xf32> to vector<1x64xf32>
    %18 = vector.extract_strided_slice %15 {offsets = [2, 0], sizes = [1, 64], strides = [1, 1]} : vector<9x64xf32> to vector<1x64xf32>
    %19 = vector.extract_strided_slice %15 {offsets = [3, 0], sizes = [1, 64], strides = [1, 1]} : vector<9x64xf32> to vector<1x64xf32>
    %20 = vector.extract_strided_slice %15 {offsets = [4, 0], sizes = [1, 64], strides = [1, 1]} : vector<9x64xf32> to vector<1x64xf32>
    %21 = vector.extract_strided_slice %15 {offsets = [5, 0], sizes = [1, 64], strides = [1, 1]} : vector<9x64xf32> to vector<1x64xf32>
    %22 = vector.extract_strided_slice %15 {offsets = [6, 0], sizes = [1, 64], strides = [1, 1]} : vector<9x64xf32> to vector<1x64xf32>
    %23 = vector.extract_strided_slice %15 {offsets = [7, 0], sizes = [1, 64], strides = [1, 1]} : vector<9x64xf32> to vector<1x64xf32>
    %24 = vector.extract_strided_slice %15 {offsets = [8, 0], sizes = [1, 64], strides = [1, 1]} : vector<9x64xf32> to vector<1x64xf32>
    %cst = arith.constant dense<0.000000e+00> : vector<16x192xf32>
    %25 = tpu.matmul %0, %3, %cst {dimension_numbers = #tpu.dot_dimension_numbers<[1], [0], [0], [1], [0, 0, 1, 1], [], []>} : vector<16x64xf32>, vector<64x192xf32>, vector<16x192xf32> -> vector<16x192xf32>
    %26 = vector.broadcast %5 : vector<1x192xf32> to vector<16x192xf32>
    %27 = arith.addf %25, %26 : vector<16x192xf32>
    %28 = vector.extract_strided_slice %27 {offsets = [0, 0], sizes = [16, 16], strides = [1, 1]} : vector<16x192xf32> to vector<16x16xf32>
    %29 = vector.extract_strided_slice %27 {offsets = [0, 64], sizes = [16, 16], strides = [1, 1]} : vector<16x192xf32> to vector<16x16xf32>
    %30 = vector.extract_strided_slice %27 {offsets = [0, 128], sizes = [16, 16], strides = [1, 1]} : vector<16x192xf32> to vector<16x16xf32>
    %cst_24 = arith.constant dense<0.000000e+00> : vector<16x16xf32>
    %31 = tpu.matmul %28, %29, %cst_24 {dimension_numbers = #tpu.dot_dimension_numbers<[1], [1], [0], [0], [0, 0, 1, 0], [], []>} : vector<16x16xf32>, vector<16x16xf32>, vector<16x16xf32> -> vector<16x16xf32>
    %cst_25 = arith.constant 2.500000e-01 : f32
    %32 = vector.broadcast %cst_25 : f32 to vector<16x16xf32>
    %33 = arith.mulf %31, %32 : vector<16x16xf32>
    %34 = arith.addf %33, %1 : vector<16x16xf32>
    %cst_26 = arith.constant dense<0xFF800000> : vector<16xf32>
    %35 = vector.multi_reduction <maximumf>, %34, %cst_26 [1] : vector<16x16xf32> to vector<16xf32>
    %36 = vector.shape_cast %35 : vector<16xf32> to vector<16x1xf32>
    %37 = vector.broadcast %36 : vector<16x1xf32> to vector<16x16xf32>
    %38 = arith.subf %34, %37 : vector<16x16xf32>
    %39 = math.exp %38 : vector<16x16xf32>
    %cst_27 = arith.constant dense<0.000000e+00> : vector<16xf32>
    %40 = vector.multi_reduction <add>, %39, %cst_27 [1] : vector<16x16xf32> to vector<16xf32>
    %41 = vector.shape_cast %40 : vector<16xf32> to vector<16x1xf32>
    %42 = tpu.reciprocal %41 {approx = true} : vector<16x1xf32> -> vector<16x1xf32>
    %43 = vector.broadcast %42 : vector<16x1xf32> to vector<16x16xf32>
    %44 = arith.mulf %39, %43 : vector<16x16xf32>
    %cst_28 = arith.constant dense<0.000000e+00> : vector<16x16xf32>
    %45 = tpu.matmul %44, %30, %cst_28 {dimension_numbers = #tpu.dot_dimension_numbers<[1], [0], [0], [1], [0, 0, 1, 1], [], []>} : vector<16x16xf32>, vector<16x16xf32>, vector<16x16xf32> -> vector<16x16xf32>
    %46 = vector.extract_strided_slice %7 {offsets = [0, 0], sizes = [16, 64], strides = [1, 1]} : vector<64x64xf32> to vector<16x64xf32>
    %cst_29 = arith.constant dense<0.000000e+00> : vector<16x64xf32>
    %47 = tpu.matmul %45, %46, %cst_29 {dimension_numbers = #tpu.dot_dimension_numbers<[1], [0], [0], [1], [0, 0, 1, 1], [], []>} : vector<16x16xf32>, vector<16x64xf32>, vector<16x64xf32> -> vector<16x64xf32>
    %48 = vector.extract_strided_slice %27 {offsets = [0, 16], sizes = [16, 16], strides = [1, 1]} : vector<16x192xf32> to vector<16x16xf32>
    %49 = vector.extract_strided_slice %27 {offsets = [0, 80], sizes = [16, 16], strides = [1, 1]} : vector<16x192xf32> to vector<16x16xf32>
    %50 = vector.extract_strided_slice %27 {offsets = [0, 144], sizes = [16, 16], strides = [1, 1]} : vector<16x192xf32> to vector<16x16xf32>
    %cst_30 = arith.constant dense<0.000000e+00> : vector<16x16xf32>
    %51 = tpu.matmul %48, %49, %cst_30 {dimension_numbers = #tpu.dot_dimension_numbers<[1], [1], [0], [0], [0, 0, 1, 0], [], []>} : vector<16x16xf32>, vector<16x16xf32>, vector<16x16xf32> -> vector<16x16xf32>
    %cst_31 = arith.constant 2.500000e-01 : f32
    %52 = vector.broadcast %cst_31 : f32 to vector<16x16xf32>
    %53 = arith.mulf %51, %52 : vector<16x16xf32>
    %54 = arith.addf %53, %1 : vector<16x16xf32>
    %cst_32 = arith.constant dense<0xFF800000> : vector<16xf32>
    %55 = vector.multi_reduction <maximumf>, %54, %cst_32 [1] : vector<16x16xf32> to vector<16xf32>
    %56 = vector.shape_cast %55 : vector<16xf32> to vector<16x1xf32>
    %57 = vector.broadcast %56 : vector<16x1xf32> to vector<16x16xf32>
    %58 = arith.subf %54, %57 : vector<16x16xf32>
    %59 = math.exp %58 : vector<16x16xf32>
    %cst_33 = arith.constant dense<0.000000e+00> : vector<16xf32>
    %60 = vector.multi_reduction <add>, %59, %cst_33 [1] : vector<16x16xf32> to vector<16xf32>
    %61 = vector.shape_cast %60 : vector<16xf32> to vector<16x1xf32>
    %62 = tpu.reciprocal %61 {approx = true} : vector<16x1xf32> -> vector<16x1xf32>
    %63 = vector.broadcast %62 : vector<16x1xf32> to vector<16x16xf32>
    %64 = arith.mulf %59, %63 : vector<16x16xf32>
    %cst_34 = arith.constant dense<0.000000e+00> : vector<16x16xf32>
    %65 = tpu.matmul %64, %50, %cst_34 {dimension_numbers = #tpu.dot_dimension_numbers<[1], [0], [0], [1], [0, 0, 1, 1], [], []>} : vector<16x16xf32>, vector<16x16xf32>, vector<16x16xf32> -> vector<16x16xf32>
    %66 = vector.extract_strided_slice %7 {offsets = [16, 0], sizes = [16, 64], strides = [1, 1]} : vector<64x64xf32> to vector<16x64xf32>
    %cst_35 = arith.constant dense<0.000000e+00> : vector<16x64xf32>
    %67 = tpu.matmul %65, %66, %cst_35 {dimension_numbers = #tpu.dot_dimension_numbers<[1], [0], [0], [1], [0, 0, 1, 1], [], []>} : vector<16x16xf32>, vector<16x64xf32>, vector<16x64xf32> -> vector<16x64xf32>
    %68 = arith.addf %47, %67 : vector<16x64xf32>
    %69 = vector.extract_strided_slice %27 {offsets = [0, 32], sizes = [16, 16], strides = [1, 1]} : vector<16x192xf32> to vector<16x16xf32>
    %70 = vector.extract_strided_slice %27 {offsets = [0, 96], sizes = [16, 16], strides = [1, 1]} : vector<16x192xf32> to vector<16x16xf32>
    %71 = vector.extract_strided_slice %27 {offsets = [0, 160], sizes = [16, 16], strides = [1, 1]} : vector<16x192xf32> to vector<16x16xf32>
    %cst_36 = arith.constant dense<0.000000e+00> : vector<16x16xf32>
    %72 = tpu.matmul %69, %70, %cst_36 {dimension_numbers = #tpu.dot_dimension_numbers<[1], [1], [0], [0], [0, 0, 1, 0], [], []>} : vector<16x16xf32>, vector<16x16xf32>, vector<16x16xf32> -> vector<16x16xf32>
    %cst_37 = arith.constant 2.500000e-01 : f32
    %73 = vector.broadcast %cst_37 : f32 to vector<16x16xf32>
    %74 = arith.mulf %72, %73 : vector<16x16xf32>
    %75 = arith.addf %74, %1 : vector<16x16xf32>
    %cst_38 = arith.constant dense<0xFF800000> : vector<16xf32>
    %76 = vector.multi_reduction <maximumf>, %75, %cst_38 [1] : vector<16x16xf32> to vector<16xf32>
    %77 = vector.shape_cast %76 : vector<16xf32> to vector<16x1xf32>
    %78 = vector.broadcast %77 : vector<16x1xf32> to vector<16x16xf32>
    %79 = arith.subf %75, %78 : vector<16x16xf32>
    %80 = math.exp %79 : vector<16x16xf32>
    %cst_39 = arith.constant dense<0.000000e+00> : vector<16xf32>
    %81 = vector.multi_reduction <add>, %80, %cst_39 [1] : vector<16x16xf32> to vector<16xf32>
    %82 = vector.shape_cast %81 : vector<16xf32> to vector<16x1xf32>
    %83 = tpu.reciprocal %82 {approx = true} : vector<16x1xf32> -> vector<16x1xf32>
    %84 = vector.broadcast %83 : vector<16x1xf32> to vector<16x16xf32>
    %85 = arith.mulf %80, %84 : vector<16x16xf32>
    %cst_40 = arith.constant dense<0.000000e+00> : vector<16x16xf32>
    %86 = tpu.matmul %85, %71, %cst_40 {dimension_numbers = #tpu.dot_dimension_numbers<[1], [0], [0], [1], [0, 0, 1, 1], [], []>} : vector<16x16xf32>, vector<16x16xf32>, vector<16x16xf32> -> vector<16x16xf32>
    %87 = vector.extract_strided_slice %7 {offsets = [32, 0], sizes = [16, 64], strides = [1, 1]} : vector<64x64xf32> to vector<16x64xf32>
    %cst_41 = arith.constant dense<0.000000e+00> : vector<16x64xf32>
    %88 = tpu.matmul %86, %87, %cst_41 {dimension_numbers = #tpu.dot_dimension_numbers<[1], [0], [0], [1], [0, 0, 1, 1], [], []>} : vector<16x16xf32>, vector<16x64xf32>, vector<16x64xf32> -> vector<16x64xf32>
    %89 = arith.addf %68, %88 : vector<16x64xf32>
    %90 = vector.extract_strided_slice %27 {offsets = [0, 48], sizes = [16, 16], strides = [1, 1]} : vector<16x192xf32> to vector<16x16xf32>
    %91 = vector.extract_strided_slice %27 {offsets = [0, 112], sizes = [16, 16], strides = [1, 1]} : vector<16x192xf32> to vector<16x16xf32>
    %92 = vector.extract_strided_slice %27 {offsets = [0, 176], sizes = [16, 16], strides = [1, 1]} : vector<16x192xf32> to vector<16x16xf32>
    %cst_42 = arith.constant dense<0.000000e+00> : vector<16x16xf32>
    %93 = tpu.matmul %90, %91, %cst_42 {dimension_numbers = #tpu.dot_dimension_numbers<[1], [1], [0], [0], [0, 0, 1, 0], [], []>} : vector<16x16xf32>, vector<16x16xf32>, vector<16x16xf32> -> vector<16x16xf32>
    %cst_43 = arith.constant 2.500000e-01 : f32
    %94 = vector.broadcast %cst_43 : f32 to vector<16x16xf32>
    %95 = arith.mulf %93, %94 : vector<16x16xf32>
    %96 = arith.addf %95, %1 : vector<16x16xf32>
    %cst_44 = arith.constant dense<0xFF800000> : vector<16xf32>
    %97 = vector.multi_reduction <maximumf>, %96, %cst_44 [1] : vector<16x16xf32> to vector<16xf32>
    %98 = vector.shape_cast %97 : vector<16xf32> to vector<16x1xf32>
    %99 = vector.broadcast %98 : vector<16x1xf32> to vector<16x16xf32>
    %100 = arith.subf %96, %99 : vector<16x16xf32>
    %101 = math.exp %100 : vector<16x16xf32>
    %cst_45 = arith.constant dense<0.000000e+00> : vector<16xf32>
    %102 = vector.multi_reduction <add>, %101, %cst_45 [1] : vector<16x16xf32> to vector<16xf32>
    %103 = vector.shape_cast %102 : vector<16xf32> to vector<16x1xf32>
    %104 = tpu.reciprocal %103 {approx = true} : vector<16x1xf32> -> vector<16x1xf32>
    %105 = vector.broadcast %104 : vector<16x1xf32> to vector<16x16xf32>
    %106 = arith.mulf %101, %105 : vector<16x16xf32>
    %cst_46 = arith.constant dense<0.000000e+00> : vector<16x16xf32>
    %107 = tpu.matmul %106, %92, %cst_46 {dimension_numbers = #tpu.dot_dimension_numbers<[1], [0], [0], [1], [0, 0, 1, 1], [], []>} : vector<16x16xf32>, vector<16x16xf32>, vector<16x16xf32> -> vector<16x16xf32>
    %108 = vector.extract_strided_slice %7 {offsets = [48, 0], sizes = [16, 64], strides = [1, 1]} : vector<64x64xf32> to vector<16x64xf32>
    %cst_47 = arith.constant dense<0.000000e+00> : vector<16x64xf32>
    %109 = tpu.matmul %107, %108, %cst_47 {dimension_numbers = #tpu.dot_dimension_numbers<[1], [0], [0], [1], [0, 0, 1, 1], [], []>} : vector<16x16xf32>, vector<16x64xf32>, vector<16x64xf32> -> vector<16x64xf32>
    %110 = arith.addf %89, %109 : vector<16x64xf32>
    %111 = arith.addf %0, %110 : vector<16x64xf32>
    %112 = vector.broadcast %16 : vector<1x64xf32> to vector<16x64xf32>
    %113 = arith.addf %111, %112 : vector<16x64xf32>
    %cst_48 = arith.constant dense<0.000000e+00> : vector<16xf32>
    %114 = vector.multi_reduction <add>, %113, %cst_48 [1] : vector<16x64xf32> to vector<16xf32>
    %115 = vector.shape_cast %114 : vector<16xf32> to vector<16x1xf32>
    %cst_49 = arith.constant 6.400000e+01 : f32
    %116 = vector.broadcast %cst_49 : f32 to vector<16x1xf32>
    %117 = arith.divf %115, %116 : vector<16x1xf32>
    %118 = vector.broadcast %117 : vector<16x1xf32> to vector<16x64xf32>
    %119 = arith.subf %113, %118 : vector<16x64xf32>
    %120 = arith.mulf %119, %119 : vector<16x64xf32>
    %cst_50 = arith.constant dense<0.000000e+00> : vector<16xf32>
    %121 = vector.multi_reduction <add>, %120, %cst_50 [1] : vector<16x64xf32> to vector<16xf32>
    %122 = vector.shape_cast %121 : vector<16xf32> to vector<16x1xf32>
    %cst_51 = arith.constant 6.400000e+01 : f32
    %123 = vector.broadcast %cst_51 : f32 to vector<16x1xf32>
    %124 = arith.divf %122, %123 : vector<16x1xf32>
    %125 = vector.broadcast %117 : vector<16x1xf32> to vector<16x64xf32>
    %126 = arith.subf %113, %125 : vector<16x64xf32>
    %cst_52 = arith.constant 9.99999974E-6 : f32
    %127 = vector.broadcast %cst_52 : f32 to vector<16x1xf32>
    %128 = arith.addf %124, %127 : vector<16x1xf32>
    %129 = math.rsqrt %128 : vector<16x1xf32>
    %130 = vector.broadcast %129 : vector<16x1xf32> to vector<16x64xf32>
    %131 = arith.mulf %126, %130 : vector<16x64xf32>
    %132 = vector.broadcast %17 : vector<1x64xf32> to vector<16x64xf32>
    %133 = arith.mulf %131, %132 : vector<16x64xf32>
    %134 = vector.broadcast %18 : vector<1x64xf32> to vector<16x64xf32>
    %135 = arith.addf %133, %134 : vector<16x64xf32>
    %136 = vector.broadcast %19 : vector<1x64xf32> to vector<16x64xf32>
    %137 = arith.addf %135, %136 : vector<16x64xf32>
    %cst_53 = arith.constant dense<0.000000e+00> : vector<16xf32>
    %138 = vector.multi_reduction <add>, %137, %cst_53 [1] : vector<16x64xf32> to vector<16xf32>
    %139 = vector.shape_cast %138 : vector<16xf32> to vector<16x1xf32>
    %cst_54 = arith.constant 6.400000e+01 : f32
    %140 = vector.broadcast %cst_54 : f32 to vector<16x1xf32>
    %141 = arith.divf %139, %140 : vector<16x1xf32>
    %142 = vector.broadcast %141 : vector<16x1xf32> to vector<16x64xf32>
    %143 = arith.subf %137, %142 : vector<16x64xf32>
    %144 = arith.mulf %143, %143 : vector<16x64xf32>
    %cst_55 = arith.constant dense<0.000000e+00> : vector<16xf32>
    %145 = vector.multi_reduction <add>, %144, %cst_55 [1] : vector<16x64xf32> to vector<16xf32>
    %146 = vector.shape_cast %145 : vector<16xf32> to vector<16x1xf32>
    %cst_56 = arith.constant 6.400000e+01 : f32
    %147 = vector.broadcast %cst_56 : f32 to vector<16x1xf32>
    %148 = arith.divf %146, %147 : vector<16x1xf32>
    %149 = vector.broadcast %141 : vector<16x1xf32> to vector<16x64xf32>
    %150 = arith.subf %137, %149 : vector<16x64xf32>
    %cst_57 = arith.constant 9.99999974E-6 : f32
    %151 = vector.broadcast %cst_57 : f32 to vector<16x1xf32>
    %152 = arith.addf %148, %151 : vector<16x1xf32>
    %153 = math.rsqrt %152 : vector<16x1xf32>
    %154 = vector.broadcast %153 : vector<16x1xf32> to vector<16x64xf32>
    %155 = arith.mulf %150, %154 : vector<16x64xf32>
    %156 = vector.broadcast %20 : vector<1x64xf32> to vector<16x64xf32>
    %157 = arith.mulf %155, %156 : vector<16x64xf32>
    %158 = vector.broadcast %21 : vector<1x64xf32> to vector<16x64xf32>
    %159 = arith.addf %157, %158 : vector<16x64xf32>
    %cst_58 = arith.constant dense<0.000000e+00> : vector<16x128xf32>
    %160 = tpu.matmul %159, %9, %cst_58 {dimension_numbers = #tpu.dot_dimension_numbers<[1], [0], [0], [1], [0, 0, 1, 1], [], []>} : vector<16x64xf32>, vector<64x128xf32>, vector<16x128xf32> -> vector<16x128xf32>
    %161 = vector.broadcast %11 : vector<1x128xf32> to vector<16x128xf32>
    %162 = arith.addf %160, %161 : vector<16x128xf32>
    %cst_59 = arith.constant 0.000000e+00 : f32
    %163 = vector.broadcast %cst_59 : f32 to vector<16x128xf32>
    %164 = arith.maximumf %162, %163 : vector<16x128xf32>
    %cst_60 = arith.constant dense<0.000000e+00> : vector<16x64xf32>
    %165 = tpu.matmul %164, %13, %cst_60 {dimension_numbers = #tpu.dot_dimension_numbers<[1], [0], [0], [1], [0, 0, 1, 1], [], []>} : vector<16x128xf32>, vector<128x64xf32>, vector<16x64xf32> -> vector<16x64xf32>
    %166 = vector.broadcast %22 : vector<1x64xf32> to vector<16x64xf32>
    %167 = arith.addf %165, %166 : vector<16x64xf32>
    %168 = arith.addf %159, %167 : vector<16x64xf32>
    %cst_61 = arith.constant dense<0.000000e+00> : vector<16xf32>
    %169 = vector.multi_reduction <add>, %168, %cst_61 [1] : vector<16x64xf32> to vector<16xf32>
    %170 = vector.shape_cast %169 : vector<16xf32> to vector<16x1xf32>
    %cst_62 = arith.constant 6.400000e+01 : f32
    %171 = vector.broadcast %cst_62 : f32 to vector<16x1xf32>
    %172 = arith.divf %170, %171 : vector<16x1xf32>
    %173 = vector.broadcast %172 : vector<16x1xf32> to vector<16x64xf32>
    %174 = arith.subf %168, %173 : vector<16x64xf32>
    %175 = arith.mulf %174, %174 : vector<16x64xf32>
    %cst_63 = arith.constant dense<0.000000e+00> : vector<16xf32>
    %176 = vector.multi_reduction <add>, %175, %cst_63 [1] : vector<16x64xf32> to vector<16xf32>
    %177 = vector.shape_cast %176 : vector<16xf32> to vector<16x1xf32>
    %cst_64 = arith.constant 6.400000e+01 : f32
    %178 = vector.broadcast %cst_64 : f32 to vector<16x1xf32>
    %179 = arith.divf %177, %178 : vector<16x1xf32>
    %180 = vector.broadcast %172 : vector<16x1xf32> to vector<16x64xf32>
    %181 = arith.subf %168, %180 : vector<16x64xf32>
    %cst_65 = arith.constant 9.99999974E-6 : f32
    %182 = vector.broadcast %cst_65 : f32 to vector<16x1xf32>
    %183 = arith.addf %179, %182 : vector<16x1xf32>
    %184 = math.rsqrt %183 : vector<16x1xf32>
    %185 = vector.broadcast %184 : vector<16x1xf32> to vector<16x64xf32>
    %186 = arith.mulf %181, %185 : vector<16x64xf32>
    %187 = vector.broadcast %23 : vector<1x64xf32> to vector<16x64xf32>
    %188 = arith.mulf %186, %187 : vector<16x64xf32>
    %189 = vector.broadcast %24 : vector<1x64xf32> to vector<16x64xf32>
    %190 = arith.addf %188, %189 : vector<16x64xf32>
    %c1 = arith.constant 1 : index
    %c0_66 = arith.constant 0 : index
    %c0_67 = arith.constant 0 : index
    %191 = vector.load %arg2[%c1, %c0_66, %c0_67] : memref<2x64x192xf32, #tpu.memory_space<vmem>>, vector<1x64x192xf32>
    %192 = vector.shape_cast %191 : vector<1x64x192xf32> to vector<64x192xf32>
    %c1_68 = arith.constant 1 : index
    %c0_69 = arith.constant 0 : index
    %c0_70 = arith.constant 0 : index
    %193 = vector.load %arg3[%c1_68, %c0_69, %c0_70] : memref<2x1x192xf32, #tpu.memory_space<vmem>>, vector<1x1x192xf32>
    %194 = vector.shape_cast %193 : vector<1x1x192xf32> to vector<1x192xf32>
    %c1_71 = arith.constant 1 : index
    %c0_72 = arith.constant 0 : index
    %c0_73 = arith.constant 0 : index
    %195 = vector.load %arg4[%c1_71, %c0_72, %c0_73] : memref<2x64x64xf32, #tpu.memory_space<vmem>>, vector<1x64x64xf32>
    %196 = vector.shape_cast %195 : vector<1x64x64xf32> to vector<64x64xf32>
    %c1_74 = arith.constant 1 : index
    %c0_75 = arith.constant 0 : index
    %c0_76 = arith.constant 0 : index
    %197 = vector.load %arg5[%c1_74, %c0_75, %c0_76] : memref<2x64x128xf32, #tpu.memory_space<vmem>>, vector<1x64x128xf32>
    %198 = vector.shape_cast %197 : vector<1x64x128xf32> to vector<64x128xf32>
    %c1_77 = arith.constant 1 : index
    %c0_78 = arith.constant 0 : index
    %c0_79 = arith.constant 0 : index
    %199 = vector.load %arg6[%c1_77, %c0_78, %c0_79] : memref<2x1x128xf32, #tpu.memory_space<vmem>>, vector<1x1x128xf32>
    %200 = vector.shape_cast %199 : vector<1x1x128xf32> to vector<1x128xf32>
    %c1_80 = arith.constant 1 : index
    %c0_81 = arith.constant 0 : index
    %c0_82 = arith.constant 0 : index
    %201 = vector.load %arg7[%c1_80, %c0_81, %c0_82] : memref<2x128x64xf32, #tpu.memory_space<vmem>>, vector<1x128x64xf32>
    %202 = vector.shape_cast %201 : vector<1x128x64xf32> to vector<128x64xf32>
    %c1_83 = arith.constant 1 : index
    %c0_84 = arith.constant 0 : index
    %c0_85 = arith.constant 0 : index
    %203 = vector.load %arg8[%c1_83, %c0_84, %c0_85] : memref<2x9x64xf32, #tpu.memory_space<vmem>>, vector<1x9x64xf32>
    %204 = vector.shape_cast %203 : vector<1x9x64xf32> to vector<9x64xf32>
    %205 = vector.extract_strided_slice %204 {offsets = [0, 0], sizes = [1, 64], strides = [1, 1]} : vector<9x64xf32> to vector<1x64xf32>
    %206 = vector.extract_strided_slice %204 {offsets = [1, 0], sizes = [1, 64], strides = [1, 1]} : vector<9x64xf32> to vector<1x64xf32>
    %207 = vector.extract_strided_slice %204 {offsets = [2, 0], sizes = [1, 64], strides = [1, 1]} : vector<9x64xf32> to vector<1x64xf32>
    %208 = vector.extract_strided_slice %204 {offsets = [3, 0], sizes = [1, 64], strides = [1, 1]} : vector<9x64xf32> to vector<1x64xf32>
    %209 = vector.extract_strided_slice %204 {offsets = [4, 0], sizes = [1, 64], strides = [1, 1]} : vector<9x64xf32> to vector<1x64xf32>
    %210 = vector.extract_strided_slice %204 {offsets = [5, 0], sizes = [1, 64], strides = [1, 1]} : vector<9x64xf32> to vector<1x64xf32>
    %211 = vector.extract_strided_slice %204 {offsets = [6, 0], sizes = [1, 64], strides = [1, 1]} : vector<9x64xf32> to vector<1x64xf32>
    %212 = vector.extract_strided_slice %204 {offsets = [7, 0], sizes = [1, 64], strides = [1, 1]} : vector<9x64xf32> to vector<1x64xf32>
    %213 = vector.extract_strided_slice %204 {offsets = [8, 0], sizes = [1, 64], strides = [1, 1]} : vector<9x64xf32> to vector<1x64xf32>
    %cst_86 = arith.constant dense<0.000000e+00> : vector<16x192xf32>
    %214 = tpu.matmul %190, %192, %cst_86 {dimension_numbers = #tpu.dot_dimension_numbers<[1], [0], [0], [1], [0, 0, 1, 1], [], []>} : vector<16x64xf32>, vector<64x192xf32>, vector<16x192xf32> -> vector<16x192xf32>
    %215 = vector.broadcast %194 : vector<1x192xf32> to vector<16x192xf32>
    %216 = arith.addf %214, %215 : vector<16x192xf32>
    %217 = vector.extract_strided_slice %216 {offsets = [0, 0], sizes = [16, 16], strides = [1, 1]} : vector<16x192xf32> to vector<16x16xf32>
    %218 = vector.extract_strided_slice %216 {offsets = [0, 64], sizes = [16, 16], strides = [1, 1]} : vector<16x192xf32> to vector<16x16xf32>
    %219 = vector.extract_strided_slice %216 {offsets = [0, 128], sizes = [16, 16], strides = [1, 1]} : vector<16x192xf32> to vector<16x16xf32>
    %cst_87 = arith.constant dense<0.000000e+00> : vector<16x16xf32>
    %220 = tpu.matmul %217, %218, %cst_87 {dimension_numbers = #tpu.dot_dimension_numbers<[1], [1], [0], [0], [0, 0, 1, 0], [], []>} : vector<16x16xf32>, vector<16x16xf32>, vector<16x16xf32> -> vector<16x16xf32>
    %cst_88 = arith.constant 2.500000e-01 : f32
    %221 = vector.broadcast %cst_88 : f32 to vector<16x16xf32>
    %222 = arith.mulf %220, %221 : vector<16x16xf32>
    %223 = arith.addf %222, %1 : vector<16x16xf32>
    %cst_89 = arith.constant dense<0xFF800000> : vector<16xf32>
    %224 = vector.multi_reduction <maximumf>, %223, %cst_89 [1] : vector<16x16xf32> to vector<16xf32>
    %225 = vector.shape_cast %224 : vector<16xf32> to vector<16x1xf32>
    %226 = vector.broadcast %225 : vector<16x1xf32> to vector<16x16xf32>
    %227 = arith.subf %223, %226 : vector<16x16xf32>
    %228 = math.exp %227 : vector<16x16xf32>
    %cst_90 = arith.constant dense<0.000000e+00> : vector<16xf32>
    %229 = vector.multi_reduction <add>, %228, %cst_90 [1] : vector<16x16xf32> to vector<16xf32>
    %230 = vector.shape_cast %229 : vector<16xf32> to vector<16x1xf32>
    %231 = tpu.reciprocal %230 {approx = true} : vector<16x1xf32> -> vector<16x1xf32>
    %232 = vector.broadcast %231 : vector<16x1xf32> to vector<16x16xf32>
    %233 = arith.mulf %228, %232 : vector<16x16xf32>
    %cst_91 = arith.constant dense<0.000000e+00> : vector<16x16xf32>
    %234 = tpu.matmul %233, %219, %cst_91 {dimension_numbers = #tpu.dot_dimension_numbers<[1], [0], [0], [1], [0, 0, 1, 1], [], []>} : vector<16x16xf32>, vector<16x16xf32>, vector<16x16xf32> -> vector<16x16xf32>
    %235 = vector.extract_strided_slice %196 {offsets = [0, 0], sizes = [16, 64], strides = [1, 1]} : vector<64x64xf32> to vector<16x64xf32>
    %cst_92 = arith.constant dense<0.000000e+00> : vector<16x64xf32>
    %236 = tpu.matmul %234, %235, %cst_92 {dimension_numbers = #tpu.dot_dimension_numbers<[1], [0], [0], [1], [0, 0, 1, 1], [], []>} : vector<16x16xf32>, vector<16x64xf32>, vector<16x64xf32> -> vector<16x64xf32>
    %237 = vector.extract_strided_slice %216 {offsets = [0, 16], sizes = [16, 16], strides = [1, 1]} : vector<16x192xf32> to vector<16x16xf32>
    %238 = vector.extract_strided_slice %216 {offsets = [0, 80], sizes = [16, 16], strides = [1, 1]} : vector<16x192xf32> to vector<16x16xf32>
    %239 = vector.extract_strided_slice %216 {offsets = [0, 144], sizes = [16, 16], strides = [1, 1]} : vector<16x192xf32> to vector<16x16xf32>
    %cst_93 = arith.constant dense<0.000000e+00> : vector<16x16xf32>
    %240 = tpu.matmul %237, %238, %cst_93 {dimension_numbers = #tpu.dot_dimension_numbers<[1], [1], [0], [0], [0, 0, 1, 0], [], []>} : vector<16x16xf32>, vector<16x16xf32>, vector<16x16xf32> -> vector<16x16xf32>
    %cst_94 = arith.constant 2.500000e-01 : f32
    %241 = vector.broadcast %cst_94 : f32 to vector<16x16xf32>
    %242 = arith.mulf %240, %241 : vector<16x16xf32>
    %243 = arith.addf %242, %1 : vector<16x16xf32>
    %cst_95 = arith.constant dense<0xFF800000> : vector<16xf32>
    %244 = vector.multi_reduction <maximumf>, %243, %cst_95 [1] : vector<16x16xf32> to vector<16xf32>
    %245 = vector.shape_cast %244 : vector<16xf32> to vector<16x1xf32>
    %246 = vector.broadcast %245 : vector<16x1xf32> to vector<16x16xf32>
    %247 = arith.subf %243, %246 : vector<16x16xf32>
    %248 = math.exp %247 : vector<16x16xf32>
    %cst_96 = arith.constant dense<0.000000e+00> : vector<16xf32>
    %249 = vector.multi_reduction <add>, %248, %cst_96 [1] : vector<16x16xf32> to vector<16xf32>
    %250 = vector.shape_cast %249 : vector<16xf32> to vector<16x1xf32>
    %251 = tpu.reciprocal %250 {approx = true} : vector<16x1xf32> -> vector<16x1xf32>
    %252 = vector.broadcast %251 : vector<16x1xf32> to vector<16x16xf32>
    %253 = arith.mulf %248, %252 : vector<16x16xf32>
    %cst_97 = arith.constant dense<0.000000e+00> : vector<16x16xf32>
    %254 = tpu.matmul %253, %239, %cst_97 {dimension_numbers = #tpu.dot_dimension_numbers<[1], [0], [0], [1], [0, 0, 1, 1], [], []>} : vector<16x16xf32>, vector<16x16xf32>, vector<16x16xf32> -> vector<16x16xf32>
    %255 = vector.extract_strided_slice %196 {offsets = [16, 0], sizes = [16, 64], strides = [1, 1]} : vector<64x64xf32> to vector<16x64xf32>
    %cst_98 = arith.constant dense<0.000000e+00> : vector<16x64xf32>
    %256 = tpu.matmul %254, %255, %cst_98 {dimension_numbers = #tpu.dot_dimension_numbers<[1], [0], [0], [1], [0, 0, 1, 1], [], []>} : vector<16x16xf32>, vector<16x64xf32>, vector<16x64xf32> -> vector<16x64xf32>
    %257 = arith.addf %236, %256 : vector<16x64xf32>
    %258 = vector.extract_strided_slice %216 {offsets = [0, 32], sizes = [16, 16], strides = [1, 1]} : vector<16x192xf32> to vector<16x16xf32>
    %259 = vector.extract_strided_slice %216 {offsets = [0, 96], sizes = [16, 16], strides = [1, 1]} : vector<16x192xf32> to vector<16x16xf32>
    %260 = vector.extract_strided_slice %216 {offsets = [0, 160], sizes = [16, 16], strides = [1, 1]} : vector<16x192xf32> to vector<16x16xf32>
    %cst_99 = arith.constant dense<0.000000e+00> : vector<16x16xf32>
    %261 = tpu.matmul %258, %259, %cst_99 {dimension_numbers = #tpu.dot_dimension_numbers<[1], [1], [0], [0], [0, 0, 1, 0], [], []>} : vector<16x16xf32>, vector<16x16xf32>, vector<16x16xf32> -> vector<16x16xf32>
    %cst_100 = arith.constant 2.500000e-01 : f32
    %262 = vector.broadcast %cst_100 : f32 to vector<16x16xf32>
    %263 = arith.mulf %261, %262 : vector<16x16xf32>
    %264 = arith.addf %263, %1 : vector<16x16xf32>
    %cst_101 = arith.constant dense<0xFF800000> : vector<16xf32>
    %265 = vector.multi_reduction <maximumf>, %264, %cst_101 [1] : vector<16x16xf32> to vector<16xf32>
    %266 = vector.shape_cast %265 : vector<16xf32> to vector<16x1xf32>
    %267 = vector.broadcast %266 : vector<16x1xf32> to vector<16x16xf32>
    %268 = arith.subf %264, %267 : vector<16x16xf32>
    %269 = math.exp %268 : vector<16x16xf32>
    %cst_102 = arith.constant dense<0.000000e+00> : vector<16xf32>
    %270 = vector.multi_reduction <add>, %269, %cst_102 [1] : vector<16x16xf32> to vector<16xf32>
    %271 = vector.shape_cast %270 : vector<16xf32> to vector<16x1xf32>
    %272 = tpu.reciprocal %271 {approx = true} : vector<16x1xf32> -> vector<16x1xf32>
    %273 = vector.broadcast %272 : vector<16x1xf32> to vector<16x16xf32>
    %274 = arith.mulf %269, %273 : vector<16x16xf32>
    %cst_103 = arith.constant dense<0.000000e+00> : vector<16x16xf32>
    %275 = tpu.matmul %274, %260, %cst_103 {dimension_numbers = #tpu.dot_dimension_numbers<[1], [0], [0], [1], [0, 0, 1, 1], [], []>} : vector<16x16xf32>, vector<16x16xf32>, vector<16x16xf32> -> vector<16x16xf32>
    %276 = vector.extract_strided_slice %196 {offsets = [32, 0], sizes = [16, 64], strides = [1, 1]} : vector<64x64xf32> to vector<16x64xf32>
    %cst_104 = arith.constant dense<0.000000e+00> : vector<16x64xf32>
    %277 = tpu.matmul %275, %276, %cst_104 {dimension_numbers = #tpu.dot_dimension_numbers<[1], [0], [0], [1], [0, 0, 1, 1], [], []>} : vector<16x16xf32>, vector<16x64xf32>, vector<16x64xf32> -> vector<16x64xf32>
    %278 = arith.addf %257, %277 : vector<16x64xf32>
    %279 = vector.extract_strided_slice %216 {offsets = [0, 48], sizes = [16, 16], strides = [1, 1]} : vector<16x192xf32> to vector<16x16xf32>
    %280 = vector.extract_strided_slice %216 {offsets = [0, 112], sizes = [16, 16], strides = [1, 1]} : vector<16x192xf32> to vector<16x16xf32>
    %281 = vector.extract_strided_slice %216 {offsets = [0, 176], sizes = [16, 16], strides = [1, 1]} : vector<16x192xf32> to vector<16x16xf32>
    %cst_105 = arith.constant dense<0.000000e+00> : vector<16x16xf32>
    %282 = tpu.matmul %279, %280, %cst_105 {dimension_numbers = #tpu.dot_dimension_numbers<[1], [1], [0], [0], [0, 0, 1, 0], [], []>} : vector<16x16xf32>, vector<16x16xf32>, vector<16x16xf32> -> vector<16x16xf32>
    %cst_106 = arith.constant 2.500000e-01 : f32
    %283 = vector.broadcast %cst_106 : f32 to vector<16x16xf32>
    %284 = arith.mulf %282, %283 : vector<16x16xf32>
    %285 = arith.addf %284, %1 : vector<16x16xf32>
    %cst_107 = arith.constant dense<0xFF800000> : vector<16xf32>
    %286 = vector.multi_reduction <maximumf>, %285, %cst_107 [1] : vector<16x16xf32> to vector<16xf32>
    %287 = vector.shape_cast %286 : vector<16xf32> to vector<16x1xf32>
    %288 = vector.broadcast %287 : vector<16x1xf32> to vector<16x16xf32>
    %289 = arith.subf %285, %288 : vector<16x16xf32>
    %290 = math.exp %289 : vector<16x16xf32>
    %cst_108 = arith.constant dense<0.000000e+00> : vector<16xf32>
    %291 = vector.multi_reduction <add>, %290, %cst_108 [1] : vector<16x16xf32> to vector<16xf32>
    %292 = vector.shape_cast %291 : vector<16xf32> to vector<16x1xf32>
    %293 = tpu.reciprocal %292 {approx = true} : vector<16x1xf32> -> vector<16x1xf32>
    %294 = vector.broadcast %293 : vector<16x1xf32> to vector<16x16xf32>
    %295 = arith.mulf %290, %294 : vector<16x16xf32>
    %cst_109 = arith.constant dense<0.000000e+00> : vector<16x16xf32>
    %296 = tpu.matmul %295, %281, %cst_109 {dimension_numbers = #tpu.dot_dimension_numbers<[1], [0], [0], [1], [0, 0, 1, 1], [], []>} : vector<16x16xf32>, vector<16x16xf32>, vector<16x16xf32> -> vector<16x16xf32>
    %297 = vector.extract_strided_slice %196 {offsets = [48, 0], sizes = [16, 64], strides = [1, 1]} : vector<64x64xf32> to vector<16x64xf32>
    %cst_110 = arith.constant dense<0.000000e+00> : vector<16x64xf32>
    %298 = tpu.matmul %296, %297, %cst_110 {dimension_numbers = #tpu.dot_dimension_numbers<[1], [0], [0], [1], [0, 0, 1, 1], [], []>} : vector<16x16xf32>, vector<16x64xf32>, vector<16x64xf32> -> vector<16x64xf32>
    %299 = arith.addf %278, %298 : vector<16x64xf32>
    %300 = arith.addf %190, %299 : vector<16x64xf32>
    %301 = vector.broadcast %205 : vector<1x64xf32> to vector<16x64xf32>
    %302 = arith.addf %300, %301 : vector<16x64xf32>
    %cst_111 = arith.constant dense<0.000000e+00> : vector<16xf32>
    %303 = vector.multi_reduction <add>, %302, %cst_111 [1] : vector<16x64xf32> to vector<16xf32>
    %304 = vector.shape_cast %303 : vector<16xf32> to vector<16x1xf32>
    %cst_112 = arith.constant 6.400000e+01 : f32
    %305 = vector.broadcast %cst_112 : f32 to vector<16x1xf32>
    %306 = arith.divf %304, %305 : vector<16x1xf32>
    %307 = vector.broadcast %306 : vector<16x1xf32> to vector<16x64xf32>
    %308 = arith.subf %302, %307 : vector<16x64xf32>
    %309 = arith.mulf %308, %308 : vector<16x64xf32>
    %cst_113 = arith.constant dense<0.000000e+00> : vector<16xf32>
    %310 = vector.multi_reduction <add>, %309, %cst_113 [1] : vector<16x64xf32> to vector<16xf32>
    %311 = vector.shape_cast %310 : vector<16xf32> to vector<16x1xf32>
    %cst_114 = arith.constant 6.400000e+01 : f32
    %312 = vector.broadcast %cst_114 : f32 to vector<16x1xf32>
    %313 = arith.divf %311, %312 : vector<16x1xf32>
    %314 = vector.broadcast %306 : vector<16x1xf32> to vector<16x64xf32>
    %315 = arith.subf %302, %314 : vector<16x64xf32>
    %cst_115 = arith.constant 9.99999974E-6 : f32
    %316 = vector.broadcast %cst_115 : f32 to vector<16x1xf32>
    %317 = arith.addf %313, %316 : vector<16x1xf32>
    %318 = math.rsqrt %317 : vector<16x1xf32>
    %319 = vector.broadcast %318 : vector<16x1xf32> to vector<16x64xf32>
    %320 = arith.mulf %315, %319 : vector<16x64xf32>
    %321 = vector.broadcast %206 : vector<1x64xf32> to vector<16x64xf32>
    %322 = arith.mulf %320, %321 : vector<16x64xf32>
    %323 = vector.broadcast %207 : vector<1x64xf32> to vector<16x64xf32>
    %324 = arith.addf %322, %323 : vector<16x64xf32>
    %325 = vector.broadcast %208 : vector<1x64xf32> to vector<16x64xf32>
    %326 = arith.addf %324, %325 : vector<16x64xf32>
    %cst_116 = arith.constant dense<0.000000e+00> : vector<16xf32>
    %327 = vector.multi_reduction <add>, %326, %cst_116 [1] : vector<16x64xf32> to vector<16xf32>
    %328 = vector.shape_cast %327 : vector<16xf32> to vector<16x1xf32>
    %cst_117 = arith.constant 6.400000e+01 : f32
    %329 = vector.broadcast %cst_117 : f32 to vector<16x1xf32>
    %330 = arith.divf %328, %329 : vector<16x1xf32>
    %331 = vector.broadcast %330 : vector<16x1xf32> to vector<16x64xf32>
    %332 = arith.subf %326, %331 : vector<16x64xf32>
    %333 = arith.mulf %332, %332 : vector<16x64xf32>
    %cst_118 = arith.constant dense<0.000000e+00> : vector<16xf32>
    %334 = vector.multi_reduction <add>, %333, %cst_118 [1] : vector<16x64xf32> to vector<16xf32>
    %335 = vector.shape_cast %334 : vector<16xf32> to vector<16x1xf32>
    %cst_119 = arith.constant 6.400000e+01 : f32
    %336 = vector.broadcast %cst_119 : f32 to vector<16x1xf32>
    %337 = arith.divf %335, %336 : vector<16x1xf32>
    %338 = vector.broadcast %330 : vector<16x1xf32> to vector<16x64xf32>
    %339 = arith.subf %326, %338 : vector<16x64xf32>
    %cst_120 = arith.constant 9.99999974E-6 : f32
    %340 = vector.broadcast %cst_120 : f32 to vector<16x1xf32>
    %341 = arith.addf %337, %340 : vector<16x1xf32>
    %342 = math.rsqrt %341 : vector<16x1xf32>
    %343 = vector.broadcast %342 : vector<16x1xf32> to vector<16x64xf32>
    %344 = arith.mulf %339, %343 : vector<16x64xf32>
    %345 = vector.broadcast %209 : vector<1x64xf32> to vector<16x64xf32>
    %346 = arith.mulf %344, %345 : vector<16x64xf32>
    %347 = vector.broadcast %210 : vector<1x64xf32> to vector<16x64xf32>
    %348 = arith.addf %346, %347 : vector<16x64xf32>
    %cst_121 = arith.constant dense<0.000000e+00> : vector<16x128xf32>
    %349 = tpu.matmul %348, %198, %cst_121 {dimension_numbers = #tpu.dot_dimension_numbers<[1], [0], [0], [1], [0, 0, 1, 1], [], []>} : vector<16x64xf32>, vector<64x128xf32>, vector<16x128xf32> -> vector<16x128xf32>
    %350 = vector.broadcast %200 : vector<1x128xf32> to vector<16x128xf32>
    %351 = arith.addf %349, %350 : vector<16x128xf32>
    %cst_122 = arith.constant 0.000000e+00 : f32
    %352 = vector.broadcast %cst_122 : f32 to vector<16x128xf32>
    %353 = arith.maximumf %351, %352 : vector<16x128xf32>
    %cst_123 = arith.constant dense<0.000000e+00> : vector<16x64xf32>
    %354 = tpu.matmul %353, %202, %cst_123 {dimension_numbers = #tpu.dot_dimension_numbers<[1], [0], [0], [1], [0, 0, 1, 1], [], []>} : vector<16x128xf32>, vector<128x64xf32>, vector<16x64xf32> -> vector<16x64xf32>
    %355 = vector.broadcast %211 : vector<1x64xf32> to vector<16x64xf32>
    %356 = arith.addf %354, %355 : vector<16x64xf32>
    %357 = arith.addf %348, %356 : vector<16x64xf32>
    %cst_124 = arith.constant dense<0.000000e+00> : vector<16xf32>
    %358 = vector.multi_reduction <add>, %357, %cst_124 [1] : vector<16x64xf32> to vector<16xf32>
    %359 = vector.shape_cast %358 : vector<16xf32> to vector<16x1xf32>
    %cst_125 = arith.constant 6.400000e+01 : f32
    %360 = vector.broadcast %cst_125 : f32 to vector<16x1xf32>
    %361 = arith.divf %359, %360 : vector<16x1xf32>
    %362 = vector.broadcast %361 : vector<16x1xf32> to vector<16x64xf32>
    %363 = arith.subf %357, %362 : vector<16x64xf32>
    %364 = arith.mulf %363, %363 : vector<16x64xf32>
    %cst_126 = arith.constant dense<0.000000e+00> : vector<16xf32>
    %365 = vector.multi_reduction <add>, %364, %cst_126 [1] : vector<16x64xf32> to vector<16xf32>
    %366 = vector.shape_cast %365 : vector<16xf32> to vector<16x1xf32>
    %cst_127 = arith.constant 6.400000e+01 : f32
    %367 = vector.broadcast %cst_127 : f32 to vector<16x1xf32>
    %368 = arith.divf %366, %367 : vector<16x1xf32>
    %369 = vector.broadcast %361 : vector<16x1xf32> to vector<16x64xf32>
    %370 = arith.subf %357, %369 : vector<16x64xf32>
    %cst_128 = arith.constant 9.99999974E-6 : f32
    %371 = vector.broadcast %cst_128 : f32 to vector<16x1xf32>
    %372 = arith.addf %368, %371 : vector<16x1xf32>
    %373 = math.rsqrt %372 : vector<16x1xf32>
    %374 = vector.broadcast %373 : vector<16x1xf32> to vector<16x64xf32>
    %375 = arith.mulf %370, %374 : vector<16x64xf32>
    %376 = vector.broadcast %212 : vector<1x64xf32> to vector<16x64xf32>
    %377 = arith.mulf %375, %376 : vector<16x64xf32>
    %378 = vector.broadcast %213 : vector<1x64xf32> to vector<16x64xf32>
    %379 = arith.addf %377, %378 : vector<16x64xf32>
    %c0_129 = arith.constant 0 : index
    %c0_130 = arith.constant 0 : index
    %380 = vector.load %arg9[%c0_129, %c0_130] : memref<64x128xf32, #tpu.memory_space<vmem>>, vector<64x128xf32>
    %cst_131 = arith.constant dense<0.000000e+00> : vector<16x128xf32>
    %381 = tpu.matmul %379, %380, %cst_131 {dimension_numbers = #tpu.dot_dimension_numbers<[1], [0], [0], [1], [0, 0, 1, 1], [], []>} : vector<16x64xf32>, vector<64x128xf32>, vector<16x128xf32> -> vector<16x128xf32>
    %c0_132 = arith.constant 0 : index
    %c0_133 = arith.constant 0 : index
    %382 = vector.load %arg10[%c0_132, %c0_133] : memref<1x128xf32, #tpu.memory_space<vmem>>, vector<1x128xf32>
    %383 = vector.broadcast %382 : vector<1x128xf32> to vector<16x128xf32>
    %384 = arith.addf %381, %383 : vector<16x128xf32>
    %c0_134 = arith.constant 0 : index
    %c0_135 = arith.constant 0 : index
    %385 = vector.load %arg11[%c0_134, %c0_135] : memref<16x128xf32, #tpu.memory_space<vmem>>, vector<16x128xf32>
    tpu.vector_store %arg11[%c0_134, %c0_135], %384 {strides = array<i32>} : memref<16x128xf32, #tpu.memory_space<vmem>>, vector<16x128xf32>,
    return
  }
}

</mosaic_0001>

<bundles_post_ra>
// kernel: music_transformer2_forward.1
= control target key start
LH: loop header
LB: loop body
LE: loop exit
PB: predicated region body
PF: predicated region fallthrough
CT: control target
= control target key end

     0   :  { %v4382_v7 = vmov 0.0   ;;  %s5186_s0 = inlined_call_operand.vmem [shape: f32[16,64], index: 0, kind: input, shape index: {}]   ;;  %s5187_s1 = inlined_call_operand.vmem [shape: f32[16,16], index: 1, kind: input, shape index: {}]   ;;  %s5188_s2 = inlined_call_operand.vmem [shape: f32[2,64,192], index: 2, kind: input, shape index: {}]   ;;  %s5189_s3 = inlined_call_operand.vmem [shape: f32[2,1,192], index: 3, kind: input, shape index: {}]   ;;  %s5190_s4 = inlined_call_operand.vmem [shape: f32[2,64,64], index: 4, kind: input, shape index: {}]   ;;  %s5191_s5 = inlined_call_operand.vmem [shape: f32[2,64,128], index: 5, kind: input, shape index: {}]   ;;  %s5192_s6 = inlined_call_operand.vmem [shape: f32[2,1,128], index: 6, kind: input, shape index: {}]   ;;  %s5193_s7 = inlined_call_operand.vmem [shape: f32[2,128,64], index: 7, kind: input, shape index: {}]   ;;  %s5194_s8 = inlined_call_operand.vmem [shape: f32[2,9,64], index: 8, kind: input, shape index: {}]   ;;  %s5195_s9 = inlined_call_operand.vmem [shape: f32[64,128], index: 9, kind: input, shape index: {}]   ;;  %s5196_s10 = inlined_call_operand.vmem [shape: f32[1,128], index: 10, kind: input, shape index: {}]   ;;  %s5197_s11 = inlined_call_operand.hbm [shape: f32[16,128], index: 11, kind: output, shape index: {}]  }
   0x1   :  { %v44_v0 = vld [vmem:[%s5188_s2 + $0x8] sm:$0xff]  ;;  %v46_v1 = vld [vmem:[%s5188_s2 + $0x18] sm:$0xff]  ;;  %v43_v2 = vld [vmem:[%s5188_s2] sm:$0xff]  ;;  %177 = vmatprep.mubr.f32.mxu0 %v4382_v7 }
   0x2   :  { %v3919_v3 = vpack.c.bf16 %v46_v1, %v44_v0  ;;  %v45_v4 = vld [vmem:[%s5188_s2 + $0x10] sm:$0xff]  ;;  %v48_v5 = vld [vmem:[%s5188_s2 + $0x28] sm:$0xff]  ;;  %v50_v6 = vld [vmem:[%s5188_s2 + $0x38] sm:$0xff] }
   0x3   :  { %v3921_v8 = vpack.c.bf16 %v45_v4, %v43_v2  ;;  %v3923_v9 = vpack.c.bf16 %v50_v6, %v48_v5  ;;  %v47_v10 = vld [vmem:[%s5188_s2 + $0x20] sm:$0xff]  ;;  %v49_v11 = vld [vmem:[%s5188_s2 + $0x30] sm:$0xff]  ;;  %v52_v12 = vld [vmem:[%s5188_s2 + $0x48] sm:$0xff] }
   0x4   :  { %3920 = vmatprep.subr.bf16.mxu0 %v3919_v3  ;;  %v54_v13 = vld [vmem:[%s5188_s2 + $0x58] sm:$0xff]  ;;  %v3925_v14 = vpack.c.bf16 %v49_v11, %v47_v10  ;;  %v51_v16 = vld [vmem:[%s5188_s2 + $0x40] sm:$0xff]  ;;  %v53_v17 = vld [vmem:[%s5188_s2 + $0x50] sm:$0xff] }
   0x5   :  { %3922 = vmatpush1.bf16.msra.mxu0 %v3921_v8  ;;  %v3927_v15 = vpack.c.bf16 %v54_v13, %v52_v12  ;;  %v56_v18 = vld [vmem:[%s5188_s2 + $0x68] sm:$0xff]  ;;  %v58_v19 = vld [vmem:[%s5188_s2 + $0x78] sm:$0xff] }
   0x6   :  { %3924 = vmatprep.subr.bf16.mxu0 %v3923_v9 }
   0x7   :  { %16 = vsyncpa [#allocation3], 0  ;;  %v3929_v20 = vpack.c.bf16 %v53_v17, %v51_v16  ;;  %v3931_v21 = vpack.c.bf16 %v58_v19, %v56_v18  ;;  %v55_v22 = vld [vmem:[%s5188_s2 + $0x60] sm:$0xff]  ;;  %v57_v23 = vld [vmem:[%s5188_s2 + $0x70] sm:$0xff]  ;;  %vm106_vm0 = vcmask 523264   ;;  %v96_v27 = vlaneseq  ;;  %s4384_s21 = smov 48  }
   0x8   :  { %v3933_v24 = vpack.c.bf16 %v57_v23, %v55_v22  ;;  %v4505_v25 = vld [vmem:[%s5186_s0] sm:$0xff]  ;;  %v4513_v26 = vld [vmem:[%s5186_s0 + $0x8] sm:$0xff]  ;;  %vm196_vm1 = vcmask 130048   ;;  %s4383_s0 = smov 64   ;;  %s4385_s22 = smov 112  }
   0x9   :  { %3926 = vmatpush1.bf16.msra.mxu0 %v3925_v14  ;;  %v4517_v28 = vshrl.u32 %v96_v27, 7  ;;  %v59_v30 = vld [vmem:[%s5189_s3] sm:$0x3]  ;;  %vm4546_vm2 = vmpackc.low %vm196_vm1, %vm196_vm1  ;;  %v4559_v51 = vld [vmem:[%s5187_s1 + $0x8] sm:$0xff]  ;;  %s4386_s23 = smov 96   ;;  %s4387_s24 = smov 32  }
   0xa   :  { %3928 = vmatprep.subr.bf16.mxu0 %v3927_v15  ;;  %v4564_v54 = vld [vmem:[%s5187_s1] sm:$0xff]  ;;  %s4388_s25 = smov 16   ;;  %s4389_s26 = smov 80  }
   0xb   :  { %v4520_v29 = vsub.s32 0, %v4517_v28  ;;  %v4527_v32 = vsub.s32 1, %v4517_v28  ;;  %s4390_s14 = smov [#allocation2]  }
   0xc   :  { %s3320_s15 = sshll.u32 %s4390_s14, 4  ;;  %s3321_s15 = int_to_ptr.vmem [resolvable:$true] %s3320_s15 }
   0xd   :  { %3930 = vmatpush1.bf16.msra.mxu0 %v3929_v20  ;;  %v99_v31 = vrot.slane %v59_v30, %v4520_v29  ;;  %v103_v36 = vrot.slane %v59_v30, %v4527_v32  ;;  %p4363_p1 = scmp.lt.s32.totalorder %s3321_s15, %s3321_s15 }
   0xe   :  { %3932 = vmatprep.subr.bf16.mxu0 %v3931_v21 }
  0x11   :  { %3934 = vmatpush1.bf16.msra.mxu0 %v3933_v24 }
  0x14   :  { %3331 = vmatmul.mubr.msk.f32.vlgmr.msra.gmra.mrb[0].mxu0 %vm106_vm0, %v4505_v25 }
  0x15   :  { %183 = vmatprep.mubr.f32.mxu0 %v4382_v7 }
  0x18   :  { %3332 = vmatmul.mubr.msk.f32.gmra.mrb[2].mxu0 %vm106_vm0, %v4513_v26 }
  0xe7   :  { %v179_v33 = vpop.f32.mrb[0].mxu0 }
  0xe8   :  { %v4529_v34 = vadd.f32 %v179_v33, %v99_v31  ;;  %v181_v35 = vpop.f32.mrb[1].mxu0 }
  0xe9   :  { %v182_v40 = vadd.f32 %v181_v35, %v103_v36 }
  0xea   :  { %3628 = vmatprep.mubr.msk.f32.mxu1 %vm196_vm1, %v4529_v34 }
  0xeb   :  { %v185_v37 = vpop.f32.mrb[2].mxu0 }
  0xec   :  { %v4534_v38 = vadd.f32 %v185_v37, %v99_v31  ;;  %v187_v39 = vpop.f32.mrb[3].mxu0 }
  0xed   :  { %v188_v41 = vadd.f32 %v187_v39, %v103_v36 }
  0xee   :  { %v4538_v42 = vpack.i.bf16 %v4534_v38, %v4529_v34 }
  0xef   :  { %v3941_v43 = vpack.c.bf16 %v188_v41, %v182_v40  ;;  %v4540_v44 = vpack.i.bf16 %v188_v41, %v182_v40 }
  0xf0   :  { %4199 = vrot.lane.b32.xlu0 %v4538_v42, %s4383_s0 }
 0x162   :  { %v4200_v45 = vpop.permute.xlu0 %4199 }
 0x163   :  { %v4202_v46 = vunpack.i.h.bf16 %v4200_v45  ;;  %v4201_v47 = vunpack.i.l.bf16 %v4200_v45 }
 0x165   :  { %v3935_v49 = vpack.c.bf16 %v4202_v46, %v4201_v47 }
 0x167   :  { %3937 = vmatprep.subr.msk.bf16.mxu1 %vm4546_vm2, %v3935_v49 }
 0x168   :  { %3940 = vmatpush3.bf16.xpose.msk.msra.mxu1 %vm4546_vm2, %v3935_v49 }
 0x169   :  { %3942 = vmatprep.subr.bf16.mxu1 %v3941_v43 }
 0x16f   :  { %3629 = vmatmul.mubr.msk.f32.vlgmr.msra.gmra.mrb[0].mxu1 %vm196_vm1, %v4534_v38 }
 0x170   :  { %3944 = vmatpush3.bf16.msra.mxu1 %v3941_v43 }
 0x242   :  { %v3630_v50 = vpop.f32.mrb[0].mxu1 }
 0x243   :  { %v281_v52 = vmul.f32 0.25, %v3630_v50  ;;  %v271_v53 = vpop.f32.mrb[1].mxu1 }
 0x244   :  { %v280_v55 = vmul.f32 0.25, %v271_v53 }
 0x245   :  { %v283_v56 = vadd.f32 %v281_v52, %v4559_v51 }
 0x246   :  { %v282_v57 = vadd.f32 %v280_v55, %v4564_v54  ;;  %v62_v55 = vld [vmem:[%s5190_s4 + $0x10] sm:$0xff] }
 0x247   :  { %v287_v58 = vsel %vm196_vm1, %v283_v56, -inf }
 0x248   :  { %288 = vmax.xlane.f32.xlu1 %v287_v58  ;;  %v284_v59 = vsel %vm196_vm1, %v282_v57, -inf }
 0x249   :  { %285 = vmax.xlane.f32.xlu0 %v284_v59 }
 0x259   :  { %4204 = vrot.lane.b32.xlu1 %v4538_v42, %s4384_s21 }
 0x25d   :  { %387 = vrot.lane.b32.xlu1 %v4529_v34, %s4385_s22 }
 0x2d5   :  { %v289_v60 = vpop.xlane.xlu1 %288 }
 0x2d6   :  { %v291_v61 = vsub.f32 %v283_v56, %v289_v60  ;;  %v286_v62 = vpop.xlane.xlu0 %285  ;;  %v63_v56 = vld [vmem:[%s5190_s4 + $0x18] sm:$0xff] }
 0x2d7   :  { %v290_v63 = vsub.f32 %v282_v57, %v286_v62  ;;  %v3955_v57 = vpack.c.bf16 %v63_v56, %v62_v55  ;;  %v64_v56 = vld [vmem:[%s5190_s4 + $0x20] sm:$0xff] }
 0x2d8   :  { %v294_v0 = vmul.f32 1.442695, %v291_v61 }
 0x2d9   :  { %v292_v1 = vmul.f32 1.442695, %v290_v63  ;;  %v4205_v2 = vpop.permute.xlu1 %4204 }
 0x2da   :  { %4268 = vpow2.f32 %v294_v0  ;;  %v4207_v3 = vunpack.i.h.bf16 %v4205_v2  ;;  %v4206_v4 = vunpack.i.l.bf16 %v4205_v2 }
 0x2db   :  { %4270 = vpow2.f32 %v292_v1 }
 0x2dc   :  { %v3945_v5 = vpack.c.bf16 %v4207_v3, %v4206_v4 }
 0x2dd   :  { %v388_v11 = vpop.permute.xlu1 %387 }
 0x2de   :  { %3947 = vmatprep.subr.msk.bf16.mxu1 %vm4546_vm2, %v3945_v5 }
 0x2e4   :  { %v4269_v6 = vpop.eup %4268 }
 0x2e5   :  { %v299_v8 = vsel %vm196_vm1, %v4269_v6, 0.0  ;;  %v4271_v9 = vpop.eup %4270 }
 0x2e6   :  { %300 = vadd.xlane.f32.xlu1 %v299_v8  ;;  %v296_v10 = vsel %vm196_vm1, %v4271_v9, 0.0 }
 0x2ea   :  { %297 = vadd.xlane.f32.xlu1 %v296_v10  ;;  %v60_v10 = vld [vmem:[%s5190_s4] sm:$0xff] }
 0x2fb   :  { %389 = vrot.lane.b32.xlu1 %v4534_v38, %s4385_s22 }
 0x373   :  { %v301_v12 = vpop.xlane.xlu1 %300 }
 0x374   :  { %4272 = vrcp.f32 %v301_v12 }
 0x377   :  { %v298_v13 = vpop.xlane.xlu1 %297 }
 0x378   :  { %4274 = vrcp.f32 %v298_v13 }
 0x37b   :  { %v390_v18 = vpop.permute.xlu1 %389 }
 0x37e   :  { %v4273_v14 = vpop.eup %4272 }
 0x37f   :  { %v305_v17 = vmul.f32 %v4273_v14, %v4269_v6 }
 0x382   :  { %v4275_v15 = vpop.eup %4274 }
 0x383   :  { %v304_v16 = vmul.f32 %v4275_v15, %v4271_v9 }
 0x385   :  { %3635 = vmatprep.mubr.msk.f32.mxu1 %vm196_vm1, %v304_v16 }
 0x386   :  { %3636 = vmatmul.mubr.msk.f32.vlgmr.msra.gmra.mrb[2].mxu1 %vm196_vm1, %v305_v17 }
 0x387   :  { %3950 = vmatpush3.bf16.xpose.msk.msra.mxu1 %vm4546_vm2, %v3945_v5  ;;  %3642 = vmatprep.mubr.msk.f32.mxu1 %vm196_vm1, %v388_v11  ;;  %v61_v11 = vld [vmem:[%s5190_s4 + $0x8] sm:$0xff] }
 0x388   :  { %3956 = vmatprep.subr.bf16.mxu1 %v3955_v57  ;;  %v3959_v12 = vpack.c.bf16 %v61_v11, %v60_v10 }
 0x38e   :  { %3643 = vmatmul.mubr.msk.f32.vlgmr.msra.gmra.mrb[4].mxu1 %vm196_vm1, %v390_v18 }
 0x38f   :  { %3958 = vmatpush3.bf16.msra.mxu1 %v3955_v57  ;;  %v65_v57 = vld [vmem:[%s5190_s4 + $0x28] sm:$0xff] }
 0x390   :  { %3960 = vmatprep.subr.bf16.mxu1 %v3959_v12 }
 0x459   :  { %v4586_v19 = vpop.f32.mrb[2].mxu1 }
 0x45a   :  { %v4588_v20 = vpop.f32.mrb[3].mxu1 }
 0x461   :  { %v3644_v21 = vpop.f32.mrb[4].mxu1 }
 0x462   :  { %v479_v22 = vmul.f32 0.25, %v3644_v21  ;;  %v469_v23 = vpop.f32.mrb[5].mxu1 }
 0x463   :  { %v478_v24 = vmul.f32 0.25, %v469_v23 }
 0x464   :  { %v481_v27 = vadd.f32 %v479_v22, %v4559_v51 }
 0x465   :  { %v480_v30 = vadd.f32 %v478_v24, %v4564_v54 }
 0x466   :  { %v485_v31 = vsel %vm196_vm1, %v481_v27, -inf }
 0x467   :  { %486 = vmax.xlane.f32.xlu1 %v485_v31  ;;  %v482_v33 = vsel %vm196_vm1, %v480_v30, -inf }
 0x468   :  { %483 = vmax.xlane.f32.xlu0 %v482_v33 }
 0x478   :  { %757 = vrot.lane.b32.xlu1 %v4534_v38, %s4386_s23 }
 0x47e   :  { %4209 = vrot.lane.b32.xlu0 %v4540_v44, %s4385_s22 }
 0x4f4   :  { %v487_v35 = vpop.xlane.xlu1 %486 }
 0x4f5   :  { %v489_v36 = vsub.f32 %v481_v27, %v487_v35  ;;  %v484_v37 = vpop.xlane.xlu0 %483 }
 0x4f6   :  { %v488_v39 = vsub.f32 %v480_v30, %v484_v37 }
 0x4f7   :  { %v492_v40 = vmul.f32 1.442695, %v489_v36 }
 0x4f8   :  { %v490_v41 = vmul.f32 1.442695, %v488_v39  ;;  %v758_v6 = vpop.permute.xlu1 %757 }
 0x4f9   :  { %4276 = vpow2.f32 %v492_v40  ;;  %v4210_v43 = vpop.permute.xlu0 %4209 }
 0x4fa   :  { %v4212_v45 = vunpack.i.h.bf16 %v4210_v43  ;;  %v4211_v46 = vunpack.i.l.bf16 %v4210_v43  ;;  %4278 = vpow2.f32 %v490_v41 }
 0x4fc   :  { %v3951_v47 = vpack.c.bf16 %v4212_v45, %v4211_v46 }
 0x4fe   :  { %3952 = vmatprep.subr.bf16.mxu0 %v3951_v47 }
 0x4ff   :  { %3954 = vmatpush3.bf16.msra.mxu0 %v3951_v47 }
 0x503   :  { %v4277_v49 = vpop.eup %4276 }
 0x504   :  { %v497_v50 = vsel %vm196_vm1, %v4277_v49, 0.0  ;;  %v4279_v52 = vpop.eup %4278 }
 0x505   :  { %498 = vadd.xlane.f32.xlu0 %v497_v50  ;;  %v494_v53 = vsel %vm196_vm1, %v4279_v52, 0.0 }
 0x509   :  { %495 = vadd.xlane.f32.xlu0 %v494_v53 }
 0x51f   :  { %4214 = vrot.lane.b32.xlu0 %v4538_v42, %s4387_s24 }
 0x523   :  { %755 = vrot.lane.b32.xlu0 %v4529_v34, %s4386_s23 }
 0x527   :  { %4219 = vrot.lane.b32.xlu0 %v4538_v42, %s4388_s25 }
 0x52b   :  { %1042 = vrot.lane.b32.xlu0 %v4529_v34, %s4389_s26 }
 0x52f   :  { %1044 = vrot.lane.b32.xlu0 %v4534_v38, %s4389_s26 }
 0x592   :  { %v499_v58 = vpop.xlane.xlu0 %498 }
 0x593   :  { %4280 = vrcp.f32 %v499_v58  ;;  %v3973_v58 = vpack.c.bf16 %v65_v57, %v64_v56 }
 0x596   :  { %v496_v42 = vpop.xlane.xlu0 %495 }
 0x597   :  { %4282 = vrcp.f32 %v496_v42 }
 0x59a   :  { %v4215_v59 = vpop.permute.xlu0 %4214 }
 0x59b   :  { %v4217_v34 = vunpack.i.h.bf16 %v4215_v59  ;;  %v4216_v60 = vunpack.i.l.bf16 %v4215_v59 }
 0x59d   :  { %v3963_v61 = vpack.c.bf16 %v4217_v34, %v4216_v60  ;;  %v4281_v62 = vpop.eup %4280 }
 0x59e   :  { %v756_v38 = vpop.permute.xlu0 %755  ;;  %v503_v2 = vmul.f32 %v4281_v62, %v4277_v49 }
 0x59f   :  { %3965 = vmatprep.subr.msk.bf16.mxu0 %vm4546_vm2, %v3963_v61 }
 0x5a1   :  { %v4283_v63 = vpop.eup %4282 }
 0x5a2   :  { %v4220_v0 = vpop.permute.xlu0 %4219  ;;  %v502_v1 = vmul.f32 %v4283_v63, %v4279_v52 }
 0x5a3   :  { %v4222_v3 = vunpack.i.h.bf16 %v4220_v0  ;;  %v4221_v4 = vunpack.i.l.bf16 %v4220_v0 }
 0x5a4   :  { %3649 = vmatprep.mubr.msk.f32.mxu0 %vm196_vm1, %v502_v1 }
 0x5a5   :  { %v3977_v5 = vpack.c.bf16 %v4222_v3, %v4221_v4  ;;  %3650 = vmatmul.mubr.msk.f32.vlgmr.msra.gmra.mrb[4].mxu0 %vm196_vm1, %v503_v2 }
 0x5a6   :  { %3968 = vmatpush3.bf16.xpose.msk.msra.mxu0 %vm4546_vm2, %v3963_v61  ;;  %3670 = vmatprep.mubr.msk.f32.mxu0 %vm196_vm1, %v756_v38  ;;  %v1043_v8 = vpop.permute.xlu0 %1042 }
 0x5a7   :  { %3979 = vmatprep.subr.msk.bf16.mxu0 %vm4546_vm2, %v3977_v5 }
 0x5aa   :  { %v1045_v9 = vpop.permute.xlu0 %1044 }
 0x5ad   :  { %3671 = vmatmul.mubr.msk.f32.vlgmr.msra.gmra.mrb[6].mxu0 %vm196_vm1, %v758_v6 }
 0x5ae   :  { %3982 = vmatpush3.bf16.xpose.msk.msra.mxu0 %vm4546_vm2, %v3977_v5  ;;  %3691 = vmatprep.mubr.msk.f32.mxu0 %vm196_vm1, %v1043_v8 }
 0x5b5   :  { %3692 = vmatmul.mubr.msk.f32.vlgmr.msra.gmra.mrb[8].mxu0 %vm196_vm1, %v1045_v9 }
 0x678   :  { %v3651_v13 = vpop.f32.mrb[4].mxu0 }
 0x679   :  { %v584_v14 = vpop.f32.mrb[5].mxu0 }
 0x67a   :  { %3656 = vmatprep.mubr.msk.f32.mxu1 %vm196_vm1, %v584_v14  ;;  %v67_v14 = vld [vmem:[%s5190_s4 + $0x38] sm:$0xff] }
 0x67b   :  { %3657 = vmatmul.mubr.msk.f32.vlgmr.msra.gmra.mrb[6].mxu1 %vm196_vm1, %v3651_v13  ;;  %v66_v13 = vld [vmem:[%s5190_s4 + $0x30] sm:$0xff] }
 0x67c   :  { %3663 = vmatprep.mubr.msk.f32.mxu1 %vm196_vm1, %v4588_v20  ;;  %3962 = vmatpush3.bf16.msra.mxu1 %v3959_v12 }
 0x680   :  { %v3672_v15 = vpop.f32.mrb[6].mxu0 }
 0x681   :  { %v847_v16 = vmul.f32 0.25, %v3672_v15  ;;  %v837_v17 = vpop.f32.mrb[7].mxu0 }
 0x682   :  { %v846_v18 = vmul.f32 0.25, %v837_v17 }
 0x683   :  { %3664 = vmatmul.mubr.msk.f32.vlgmr.msra.gmra.mrb[6].mxu1 %vm196_vm1, %v4586_v19  ;;  %v849_v21 = vadd.f32 %v847_v16, %v4559_v51 }
 0x684   :  { %v848_v22 = vadd.f32 %v846_v18, %v4564_v54  ;;  %v3987_v18 = vpack.c.bf16 %v67_v14, %v66_v13 }
 0x685   :  { %v853_v23 = vsel %vm196_vm1, %v849_v21, -inf }
 0x686   :  { %854 = vmax.xlane.f32.xlu1 %v853_v23  ;;  %v850_v24 = vsel %vm196_vm1, %v848_v22, -inf }
 0x687   :  { %851 = vmax.xlane.f32.xlu0 %v850_v24 }
 0x688   :  { %v3693_v27 = vpop.f32.mrb[8].mxu0 }
 0x689   :  { %v1124_v20 = vpop.f32.mrb[9].mxu0 }
 0x68a   :  { %v1133_v45 = vmul.f32 0.25, %v1124_v20  ;;  %v4681_v20 = vld [vmem:[%s5194_s8] sm:$0xff] }
 0x68c   :  { %v1135_v50 = vadd.f32 %v1133_v45, %v4564_v54 }
 0x68e   :  { %v1137_v52 = vsel %vm196_vm1, %v1135_v50, -inf }
 0x697   :  { %4224 = vrot.lane.b32.xlu1 %v4540_v44, %s4386_s23 }
 0x69b   :  { %4229 = vrot.lane.b32.xlu1 %v4540_v44, %s4389_s26  ;;  %v1134_v44 = vmul.f32 0.25, %v3693_v27 }
 0x69d   :  { %v1136_v53 = vadd.f32 %v1134_v44, %v4559_v51 }
 0x69f   :  { %v1140_v55 = vsel %vm196_vm1, %v1136_v53, -inf }
 0x713   :  { %v855_v30 = vpop.xlane.xlu1 %854 }
 0x714   :  { %v857_v19 = vsub.f32 %v849_v21, %v855_v30  ;;  %v852_v31 = vpop.xlane.xlu0 %851  ;;  %v1334_v30 = vrot.slane %v4681_v20, %v4520_v29 }
 0x715   :  { %v856_v33 = vsub.f32 %v848_v22, %v852_v31 }
 0x716   :  { %v860_v35 = vmul.f32 1.442695, %v857_v19 }
 0x717   :  { %v858_v36 = vmul.f32 1.442695, %v856_v33  ;;  %v4225_v37 = vpop.permute.xlu1 %4224 }
 0x718   :  { %v4227_v39 = vunpack.i.h.bf16 %v4225_v37  ;;  %v4226_v40 = vunpack.i.l.bf16 %v4225_v37 }
 0x719   :  { %4284 = vpow2.f32 %v858_v36 }
 0x71a   :  { %v3969_v41 = vpack.c.bf16 %v4227_v39, %v4226_v40  ;;  %4286 = vpow2.f32 %v860_v35 }
 0x71b   :  { %v4230_v60 = vpop.permute.xlu1 %4229 }
 0x71c   :  { %3970 = vmatprep.subr.bf16.mxu1 %v3969_v41  ;;  %v4232_v0 = vunpack.i.h.bf16 %v4230_v60  ;;  %v4231_v1 = vunpack.i.l.bf16 %v4230_v60 }
 0x71d   :  { %3972 = vmatpush3.bf16.msra.mxu1 %v3969_v41 }
 0x71e   :  { %3974 = vmatprep.subr.bf16.mxu1 %v3973_v58  ;;  %v3983_v5 = vpack.c.bf16 %v4232_v0, %v4231_v1 }
 0x723   :  { %v4285_v43 = vpop.eup %4284 }
 0x724   :  { %v862_v46 = vsel %vm196_vm1, %v4285_v43, 0.0  ;;  %v4287_v47 = vpop.eup %4286 }
 0x725   :  { %863 = vadd.xlane.f32.xlu0 %v862_v46  ;;  %v865_v49 = vsel %vm196_vm1, %v4287_v47, 0.0 }
 0x729   :  { %866 = vadd.xlane.f32.xlu0 %v865_v49 }
 0x72d   :  { %1138 = vmax.xlane.f32.xlu0 %v1137_v52 }
 0x731   :  { %1141 = vmax.xlane.f32.xlu0 %v1140_v55 }
 0x7b2   :  { %v864_v54 = vpop.xlane.xlu0 %863 }
 0x7b3   :  { %4288 = vrcp.f32 %v864_v54  ;;  %v1372_v54 = vsub.s32 2, %v4517_v28 }
 0x7b5   :  { %v1373_v60 = vrot.slane %v4681_v20, %v1372_v54 }
 0x7b6   :  { %v867_v42 = vpop.xlane.xlu0 %866 }
 0x7b7   :  { %4290 = vrcp.f32 %v867_v42  ;;  %v1367_v42 = vrot.slane %v4681_v20, %v4527_v32 }
 0x7ba   :  { %v1139_v59 = vpop.xlane.xlu0 %1138 }
 0x7bb   :  { %v1143_v51 = vsub.f32 %v1135_v50, %v1139_v59  ;;  %v1378_v59 = vsub.s32 3, %v4517_v28 }
 0x7bd   :  { %v4289_v34 = vpop.eup %4288  ;;  %v1145_v61 = vmul.f32 1.442695, %v1143_v51 }
 0x7be   :  { %v1142_v38 = vpop.xlane.xlu0 %1141  ;;  %v870_v62 = vmul.f32 %v4289_v34, %v4285_v43 }
 0x7bf   :  { %4292 = vpow2.f32 %v1145_v61  ;;  %v1144_v63 = vsub.f32 %v1136_v53, %v1142_v38  ;;  %v1379_v38 = vrot.slane %v4681_v20, %v1378_v59 }
 0x7c0   :  { %3677 = vmatprep.mubr.msk.f32.mxu1 %vm196_vm1, %v870_v62 }
 0x7c1   :  { %v4291_v2 = vpop.eup %4290  ;;  %v1147_v3 = vmul.f32 1.442695, %v1144_v63 }
 0x7c2   :  { %v871_v4 = vmul.f32 %v4291_v2, %v4287_v47 }
 0x7c3   :  { %4294 = vpow2.f32 %v1147_v3 }
 0x7c4   :  { %3678 = vmatmul.mubr.msk.f32.vlgmr.msra.gmra.mrb[8].mxu1 %vm196_vm1, %v871_v4 }
 0x7c5   :  { %3976 = vmatpush3.bf16.msra.mxu1 %v3973_v58 }
 0x7c6   :  { %3984 = vmatprep.subr.bf16.mxu1 %v3983_v5 }
 0x7c9   :  { %v4293_v6 = vpop.eup %4292 }
 0x7ca   :  { %v1149_v8 = vsel %vm196_vm1, %v4293_v6, 0.0 }
 0x7cb   :  { %1150 = vadd.xlane.f32.xlu0 %v1149_v8 }
 0x7cd   :  { %v4295_v9 = vpop.eup %4294 }
 0x7ce   :  { %v1152_v10 = vsel %vm196_vm1, %v4295_v9, 0.0 }
 0x7cf   :  { %1153 = vadd.xlane.f32.xlu0 %v1152_v10 }
 0x858   :  { %v1151_v11 = vpop.xlane.xlu0 %1150 }
 0x859   :  { %4296 = vrcp.f32 %v1151_v11 }
 0x85c   :  { %v1154_v12 = vpop.xlane.xlu0 %1153 }
 0x85d   :  { %4298 = vrcp.f32 %v1154_v12 }
 0x863   :  { %v4297_v15 = vpop.eup %4296 }
 0x864   :  { %v1157_v22 = vmul.f32 %v4297_v15, %v4293_v6 }
 0x867   :  { %v4299_v21 = vpop.eup %4298 }
 0x868   :  { %v1158_v23 = vmul.f32 %v4299_v21, %v4295_v9  ;;  %v69_v21 = vld [vmem:[%s5191_s5 + $0x8] sm:$0xff] }
 0x897   :  { %v3679_v16 = vpop.f32.mrb[8].mxu1 }
 0x898   :  { %v950_v17 = vpop.f32.mrb[9].mxu1 }
 0x899   :  { %3684 = vmatprep.mubr.msk.f32.mxu1 %vm196_vm1, %v950_v17 }
 0x89a   :  { %3685 = vmatmul.mubr.msk.f32.vlgmr.msra.gmra.mrb[6].mxu1 %vm196_vm1, %v3679_v16 }
 0x89b   :  { %3986 = vmatpush3.bf16.msra.mxu1 %v3983_v5  ;;  %3698 = vmatprep.mubr.msk.f32.mxu1 %vm196_vm1, %v1157_v22 }
 0x89c   :  { %3988 = vmatprep.subr.bf16.mxu1 %v3987_v18 }
 0x89e   :  { %3699 = vmatmul.mubr.msk.f32.vlgmr.msra.gmra.mrb[10].mxu1 %vm196_vm1, %v1158_v23  ;;  %v70_v23 = vld [vmem:[%s5191_s5 + $0x10] sm:$0xff] }
 0x89f   :  { %3990 = vmatpush3.bf16.msra.mxu1 %v3987_v18  ;;  %v68_v18 = vld [vmem:[%s5191_s5] sm:$0xff] }
 0x8a0   :  { %v3991_v22 = vpack.c.bf16 %v69_v21, %v68_v18 }
 0x8a2   :  { %3992 = vmatprep.subr.bf16.mxu0 %v3991_v22 }
 0x8a3   :  { %3994 = vmatpush3.bf16.msra.mxu0 %v3991_v22 }
 0x971   :  { %v3700_v24 = vpop.f32.mrb[10].mxu1 }
 0x972   :  { %v1237_v27 = vpop.f32.mrb[11].mxu1 }
 0x973   :  { %3705 = vmatprep.mubr.msk.f32.mxu1 %vm196_vm1, %v1237_v27 }
 0x974   :  { %3706 = vmatmul.mubr.msk.f32.vlgmr.msra.gmra.mrb[6].mxu1 %vm196_vm1, %v3700_v24  ;;  %v71_v24 = vld [vmem:[%s5191_s5 + $0x18] sm:$0xff] }
 0x975   :  { %v3995_v27 = vpack.c.bf16 %v71_v24, %v70_v23 }
 0x977   :  { %3996 = vmatprep.subr.bf16.mxu0 %v3995_v27 }
 0x978   :  { %3998 = vmatpush3.bf16.msra.mxu0 %v3995_v27  ;;  %v1511_v27 = vsub.s32 6, %v4517_v28 }
 0xa47   :  { %v3707_v19 = vpop.f32.mrb[6].mxu1 }
 0xa48   :  { %v1330_v31 = vadd.f32 %v3707_v19, %v4513_v26  ;;  %v1318_v33 = vpop.f32.mrb[7].mxu1  ;;  %v73_v19 = vld [vmem:[%s5191_s5 + $0x28] sm:$0xff] }
 0xa49   :  { %v1329_v35 = vadd.f32 %v1318_v33, %v4505_v25  ;;  %v74_v33 = vld [vmem:[%s5191_s5 + $0x30] sm:$0xff] }
 0xa4a   :  { %v1336_v36 = vadd.f32 %v1334_v30, %v1330_v31 }
 0xa4b   :  { %v1335_v37 = vadd.f32 %v1334_v30, %v1329_v35  ;;  %v72_v30 = vld [vmem:[%s5191_s5 + $0x20] sm:$0xff]  ;;  %v75_v35 = vld [vmem:[%s5191_s5 + $0x38] sm:$0xff] }
 0xa4c   :  { %v1340_v39 = vsel %vm106_vm0, %v1336_v36, 0.0  ;;  %v3999_v31 = vpack.c.bf16 %v73_v19, %v72_v30  ;;  %v1512_v30 = vrot.slane %v4681_v20, %v1511_v27 }
 0xa4d   :  { %1341 = vadd.xlane.f32.xlu1 %v1340_v39  ;;  %v1337_v40 = vsel %vm106_vm0, %v1335_v37, 0.0  ;;  %v78_v39 = vld [vmem:[%s5193_s7 + $0x8] sm:$0xff] }
 0xa4e   :  { %1338 = vadd.xlane.f32.xlu0 %v1337_v40  ;;  %4000 = vmatprep.subr.bf16.mxu0 %v3999_v31  ;;  %v79_v40 = vld [vmem:[%s5193_s7 + $0x10] sm:$0xff] }
 0xa4f   :  { %4002 = vmatpush3.bf16.msra.mxu0 %v3999_v31 }
 0xada   :  { %v1342_v41 = vpop.xlane.xlu1 %1341 }
 0xadb   :  { %v1345_v43 = vmul.f32 0.015625, %v1342_v41  ;;  %v1339_v45 = vpop.xlane.xlu0 %1338 }
 0xadc   :  { %v1344_v46 = vmul.f32 0.015625, %v1339_v45 }
 0xadd   :  { %v1347_v47 = vsub.f32 %v1336_v36, %v1345_v43  ;;  %v4003_v36 = vpack.c.bf16 %v75_v35, %v74_v33  ;;  %v80_v43 = vld [vmem:[%s5193_s7 + $0x18] sm:$0xff] }
 0xade   :  { %v1346_v44 = vsub.f32 %v1335_v37, %v1344_v46  ;;  %v77_v37 = vld [vmem:[%s5193_s7] sm:$0xff]  ;;  %v4011_v45 = vpack.c.bf16 %v80_v43, %v79_v40 }
 0xadf   :  { %v1349_v50 = vmul.f32 %v1347_v47, %v1347_v47  ;;  %4004 = vmatprep.subr.bf16.mxu0 %v4003_v36  ;;  %v4007_v41 = vpack.c.bf16 %v78_v39, %v77_v37  ;;  %v81_v46 = vld [vmem:[%s5193_s7 + $0x20] sm:$0xff] }
 0xae0   :  { %v1348_v49 = vmul.f32 %v1346_v44, %v1346_v44  ;;  %4006 = vmatpush3.bf16.msra.mxu0 %v4003_v36 }
 0xae1   :  { %v1353_v25 = vsel %vm106_vm0, %v1349_v50, 0.0  ;;  %4008 = vmatprep.subr.bf16.mxu1 %v4007_v41 }
 0xae2   :  { %v1350_v26 = vsel %vm106_vm0, %v1348_v49, 0.0  ;;  %4010 = vmatpush3.bf16.msra.mxu1 %v4007_v41  ;;  %v83_v49 = vld [vmem:[%s5193_s7 + $0x30] sm:$0xff] }
 0xae3   :  { %1351 = vadd.xlane.f32.xlu0 %v1350_v26  ;;  %4012 = vmatprep.subr.bf16.mxu1 %v4011_v45  ;;  %v84_v26 = vld [vmem:[%s5193_s7 + $0x38] sm:$0xff] }
 0xae4   :  { %v4019_v50 = vpack.c.bf16 %v84_v26, %v83_v49 }
 0xae6   :  { %4014 = vmatpush3.bf16.msra.mxu1 %v4011_v45 }
 0xae7   :  { %1354 = vadd.xlane.f32.xlu0 %v1353_v25  ;;  %v85_v25 = vld [vmem:[%s5193_s7 + $0x40] sm:$0xff] }
 0xb70   :  { %v1352_v52 = vpop.xlane.xlu0 %1351 }
 0xb71   :  { %v1356_v53 = vmul.f32 0.015625, %v1352_v52  ;;  %v86_v52 = vld [vmem:[%s5193_s7 + $0x48] sm:$0xff] }
 0xb73   :  { %v1358_v55 = vadd.f32 1e-05, %v1356_v53  ;;  %v4023_v53 = vpack.c.bf16 %v86_v52, %v85_v25  ;;  %v3370_v52 = vld [vmem:[%s5188_s2 + $0x88] sm:$0xff] }
 0xb74   :  { %v1355_v56 = vpop.xlane.xlu0 %1354 }
 0xb75   :  { %4300 = vrsqrt.f32 %v1358_v55  ;;  %v1357_v57 = vmul.f32 0.015625, %v1355_v56  ;;  %v87_v55 = vld [vmem:[%s5193_s7 + $0x50] sm:$0xff]  ;;  %v88_v56 = vld [vmem:[%s5193_s7 + $0x58] sm:$0xff] }
 0xb77   :  { %v1359_v58 = vadd.f32 1e-05, %v1357_v57  ;;  %v4027_v57 = vpack.c.bf16 %v88_v56, %v87_v55  ;;  %v3369_v56 = vld [vmem:[%s5188_s2 + $0x80] sm:$0xff] }
 0xb79   :  { %4302 = vrsqrt.f32 %v1359_v58  ;;  %v89_v58 = vld [vmem:[%s5193_s7 + $0x60] sm:$0xff] }
 0xb7f   :  { %v4301_v51 = vpop.eup %4300 }
 0xb80   :  { %v1362_v34 = vmul.f32 %v4301_v51, %v1346_v44 }
 0xb82   :  { %v1368_v61 = vmul.f32 %v1367_v42, %v1362_v34 }
 0xb83   :  { %v4303_v62 = vpop.eup %4302 }
 0xb84   :  { %v1374_v63 = vadd.f32 %v1373_v60, %v1368_v61  ;;  %v1363_v0 = vmul.f32 %v4303_v62, %v1347_v47  ;;  %v82_v47 = vld [vmem:[%s5193_s7 + $0x28] sm:$0xff] }
 0xb85   :  { %v4015_v44 = vpack.c.bf16 %v82_v47, %v81_v46 }
 0xb86   :  { %v1380_v1 = vadd.f32 %v1379_v38, %v1374_v63  ;;  %v1369_v2 = vmul.f32 %v1367_v42, %v1363_v0  ;;  %v90_v42 = vld [vmem:[%s5193_s7 + $0x68] sm:$0xff]  ;;  %v1410_v0 = vsub.s32 4, %v4517_v28 }
 0xb87   :  { %4016 = vmatprep.subr.bf16.mxu1 %v4015_v44  ;;  %v4031_v51 = vpack.c.bf16 %v90_v42, %v89_v58  ;;  %v3374_v42 = vld [vmem:[%s5188_s2 + $0xa8] sm:$0xff] }
 0xb88   :  { %v1382_v3 = vsel %vm106_vm0, %v1380_v1, 0.0  ;;  %v1375_v4 = vadd.f32 %v1373_v60, %v1369_v2  ;;  %4018 = vmatpush3.bf16.msra.mxu1 %v4015_v44  ;;  %v1411_v2 = vrot.slane %v4681_v20, %v1410_v0 }
 0xb89   :  { %1383 = vadd.xlane.f32.xlu0 %v1382_v3  ;;  %4020 = vmatprep.subr.bf16.mxu1 %v4019_v50 }
 0xb8a   :  { %v1381_v5 = vadd.f32 %v1379_v38, %v1375_v4 }
 0xb8c   :  { %v1385_v6 = vsel %vm106_vm0, %v1381_v5, 0.0  ;;  %4022 = vmatpush3.bf16.msra.mxu1 %v4019_v50 }
 0xb8d   :  { %1386 = vadd.xlane.f32.xlu0 %v1385_v6  ;;  %4024 = vmatprep.subr.bf16.mxu1 %v4023_v53 }
 0xb90   :  { %4026 = vmatpush3.bf16.msra.mxu1 %v4023_v53  ;;  %v3372_v53 = vld [vmem:[%s5188_s2 + $0x98] sm:$0xff] }
 0xb91   :  { %4028 = vmatprep.subr.bf16.mxu1 %v4027_v57  ;;  %v4039_v55 = vpack.c.bf16 %v3372_v53, %v3370_v52 }
 0xb93   :  { %4040 = vmatprep.subr.bf16.mxu0 %v4039_v55 }
 0xb94   :  { %4030 = vmatpush3.bf16.msra.mxu1 %v4027_v57  ;;  %v3371_v57 = vld [vmem:[%s5188_s2 + $0x90] sm:$0xff] }
 0xb95   :  { %4032 = vmatprep.subr.bf16.mxu1 %v4031_v51  ;;  %v4041_v58 = vpack.c.bf16 %v3371_v57, %v3369_v56 }
 0xb98   :  { %4034 = vmatpush3.bf16.msra.mxu1 %v4031_v51  ;;  %v3376_v51 = vld [vmem:[%s5188_s2 + $0xb8] sm:$0xff] }
 0xc16   :  { %v1384_v8 = vpop.xlane.xlu0 %1383 }
 0xc17   :  { %v1388_v9 = vmul.f32 0.015625, %v1384_v8 }
 0xc19   :  { %v4703_v10 = vsub.f32 %v1380_v1, %v1388_v9  ;;  %v1416_v1 = vsub.s32 5, %v4517_v28 }
 0xc1a   :  { %v1387_v11 = vpop.xlane.xlu0 %1386 }
 0xc1b   :  { %v1389_v12 = vmul.f32 0.015625, %v1387_v11  ;;  %v1392_v13 = vmul.f32 %v4703_v10, %v4703_v10 }
 0xc1d   :  { %v4707_v14 = vsub.f32 %v1381_v5, %v1389_v12  ;;  %v1394_v15 = vsel %vm106_vm0, %v1392_v13, 0.0  ;;  %v1417_v5 = vrot.slane %v4681_v20, %v1416_v1 }
 0xc1e   :  { %1395 = vadd.xlane.f32.xlu0 %v1394_v15  ;;  %v92_v15 = vld [vmem:[%s5193_s7 + $0x78] sm:$0xff] }
 0xc1f   :  { %v1393_v16 = vmul.f32 %v4707_v14, %v4707_v14 }
 0xc21   :  { %v1397_v17 = vsel %vm106_vm0, %v1393_v16, 0.0 }
 0xc22   :  { %1398 = vadd.xlane.f32.xlu0 %v1397_v17 }
 0xcab   :  { %v1396_v34 = vpop.xlane.xlu0 %1395 }
 0xcac   :  { %v1400_v60 = vmul.f32 0.015625, %v1396_v34  ;;  %v4043_v34 = vpack.c.bf16 %v3376_v51, %v3374_v42 }
 0xcae   :  { %v1402_v61 = vadd.f32 1e-05, %v1400_v60  ;;  %v3373_v60 = vld [vmem:[%s5188_s2 + $0xa0] sm:$0xff] }
 0xcaf   :  { %v1399_v38 = vpop.xlane.xlu0 %1398 }
 0xcb0   :  { %4304 = vrsqrt.f32 %v1402_v61  ;;  %v1401_v62 = vmul.f32 0.015625, %v1399_v38  ;;  %v3375_v61 = vld [vmem:[%s5188_s2 + $0xb0] sm:$0xff] }
 0xcb1   :  { %v4045_v38 = vpack.c.bf16 %v3375_v61, %v3373_v60 }
 0xcb2   :  { %v1403_v63 = vadd.f32 1e-05, %v1401_v62  ;;  %v3378_v62 = vld [vmem:[%s5188_s2 + $0xc8] sm:$0xff] }
 0xcb4   :  { %4306 = vrsqrt.f32 %v1403_v63  ;;  %v3380_v63 = vld [vmem:[%s5188_s2 + $0xd8] sm:$0xff] }
 0xcba   :  { %v4305_v3 = vpop.eup %4304 }
 0xcbb   :  { %v1406_v4 = vmul.f32 %v4305_v3, %v4703_v10  ;;  %v91_v10 = vld [vmem:[%s5193_s7 + $0x70] sm:$0xff]  ;;  %v3377_v3 = vld [vmem:[%s5188_s2 + $0xc0] sm:$0xff] }
 0xcbc   :  { %v4035_v16 = vpack.c.bf16 %v92_v15, %v91_v10 }
 0xcbd   :  { %v1412_v6 = vmul.f32 %v1411_v2, %v1406_v4  ;;  %v3379_v4 = vld [vmem:[%s5188_s2 + $0xd0] sm:$0xff] }
 0xcbe   :  { %v4307_v8 = vpop.eup %4306  ;;  %4036 = vmatprep.subr.bf16.mxu1 %v4035_v16 }
 0xcbf   :  { %v1407_v9 = vmul.f32 %v4307_v8, %v4707_v14  ;;  %v1418_v11 = vadd.f32 %v1417_v5, %v1412_v6  ;;  %4038 = vmatpush3.bf16.msra.mxu1 %v4035_v16  ;;  %v3365_v14 = vld [vmem:[%s5192_s6] ss:$0 sm:$0xff]  ;;  %v3382_v6 = vld [vmem:[%s5188_s2 + $0xe8] sm:$0xff]  ;;  %v3384_v8 = vld [vmem:[%s5188_s2 + $0xf8] sm:$0xff] }
 0xcc1   :  { %v1413_v12 = vmul.f32 %v1411_v2, %v1407_v9  ;;  %3724 = vmatprep.mubr.msk.f32.mxu0 %vm106_vm0, %v1418_v11  ;;  %v4047_v2 = vpack.c.bf16 %v3380_v63, %v3378_v62  ;;  %v3381_v9 = vld [vmem:[%s5188_s2 + $0xe0] sm:$0xff] }
 0xcc3   :  { %v1419_v13 = vadd.f32 %v1417_v5, %v1413_v12  ;;  %v4049_v5 = vpack.c.bf16 %v3379_v4, %v3377_v3  ;;  %v3383_v12 = vld [vmem:[%s5188_s2 + $0xf0] sm:$0xff] }
 0xcc5   :  { %3725 = vmatmul.mubr.msk.f32.vlgmr.msra.gmra.mrb[10].mxu0 %vm106_vm0, %v1419_v13 }
 0xcc6   :  { %1768 = vmatprep.mubr.f32.mxu0 %v4382_v7  ;;  %4042 = vmatpush1.bf16.msra.mxu0 %v4041_v58 }
 0xcc7   :  { %4044 = vmatprep.subr.bf16.mxu0 %v4043_v34 }
 0xcca   :  { %4046 = vmatpush1.bf16.msra.mxu0 %v4045_v38 }
 0xccb   :  { %4048 = vmatprep.subr.bf16.mxu0 %v4047_v2 }
 0xcce   :  { %4050 = vmatpush1.bf16.msra.mxu0 %v4049_v5 }
 0xd98   :  { %v3726_v17 = vpop.f32.mrb[10].mxu0 }
 0xd99   :  { %v1504_v18 = vadd.f32 %v3726_v17, %v3365_v14  ;;  %v1498_v21 = vpop.f32.mrb[11].mxu0 }
 0xd9a   :  { %v1499_v22 = vadd.f32 %v3365_v14, %v1498_v21  ;;  %v1618_v21 = vsub.s32 7, %v4517_v28  ;;  %v3459_v28 = vld [vmem:[%s5196_s10] ss:$0 sm:$0xff] }
 0xd9b   :  { %v1508_v24 = vmax.f32 %v1504_v18, 0.0 }
 0xd9c   :  { %v1507_v23 = vmax.f32 %v1499_v22, 0.0  ;;  %v1619_v22 = vrot.slane %v4681_v20, %v1618_v21  ;;  %v3385_v20 = vld [vmem:[%s5189_s3 + $0x2] sm:$0x3] }
 0xd9e   :  { %3759 = vmatprep.mubr.f32.mxu1 %v1507_v23 }
 0xd9f   :  { %3760 = vmatmul.mubr.f32.vlgmr.msra.gmra.mrb[12].mxu1 %v1508_v24 }
 0xe72   :  { %v3761_v19 = vpop.f32.mrb[12].mxu1 }
 0xe73   :  { %v1579_v31 = vpop.f32.mrb[13].mxu1  ;;  %v1585_v33 = vadd.f32 %v3761_v19, %v1512_v30 }
 0xe74   :  { %v1580_v35 = vadd.f32 %v1579_v31, %v1512_v30  ;;  %v3368_v30 = vld [vmem:[%s5194_s8 + $0x8] ss:$0 sm:$0xff] }
 0xe75   :  { %v1589_v39 = vadd.f32 %v1585_v33, %v1419_v13  ;;  %v4053_v13 = vpack.c.bf16 %v3383_v12, %v3381_v9  ;;  %v4925_v9 = vld [vmem:[%s5187_s1 + $0x8] sm:$0xff]  ;;  %v4931_v12 = vld [vmem:[%s5187_s1] sm:$0xff] }
 0xe76   :  { %v1588_v36 = vadd.f32 %v1580_v35, %v1418_v11  ;;  %v4051_v11 = vpack.c.bf16 %v3384_v8, %v3382_v6 }
 0xe77   :  { %v1593_v40 = vsel %vm106_vm0, %v1589_v39, 0.0 }
 0xe78   :  { %v1590_v37 = vsel %vm106_vm0, %v1588_v36, 0.0  ;;  %4052 = vmatprep.subr.bf16.mxu0 %v4051_v11 }
 0xe79   :  { %1591 = vadd.xlane.f32.xlu0 %v1590_v37  ;;  %4054 = vmatpush1.bf16.msra.mxu0 %v4053_v13 }
 0xe7d   :  { %1594 = vadd.xlane.f32.xlu0 %v1593_v40 }
 0xf06   :  { %v1592_v41 = vpop.xlane.xlu0 %1591 }
 0xf07   :  { %v1596_v43 = vmul.f32 0.015625, %v1592_v41 }
 0xf09   :  { %v1598_v45 = vsub.f32 %v1588_v36, %v1596_v43 }
 0xf0a   :  { %v1595_v46 = vpop.xlane.xlu0 %1594 }
 0xf0b   :  { %v1597_v47 = vmul.f32 0.015625, %v1595_v46  ;;  %v1600_v44 = vmul.f32 %v1598_v45, %v1598_v45 }
 0xf0d   :  { %v1599_v49 = vsub.f32 %v1589_v39, %v1597_v47  ;;  %v1602_v26 = vsel %vm106_vm0, %v1600_v44, 0.0  ;;  %v1691_v39 = vrot.slane %v3385_v20, %v4520_v29 }
 0xf0e   :  { %1603 = vadd.xlane.f32.xlu0 %v1602_v26 }
 0xf0f   :  { %v1601_v50 = vmul.f32 %v1599_v49, %v1599_v49 }
 0xf11   :  { %v1605_v25 = vsel %vm106_vm0, %v1601_v50, 0.0 }
 0xf12   :  { %1606 = vadd.xlane.f32.xlu1 %v1605_v25 }
 0xf9b   :  { %v1604_v10 = vpop.xlane.xlu0 %1603 }
 0xf9c   :  { %v1608_v15 = vmul.f32 0.015625, %v1604_v10 }
 0xf9e   :  { %v1610_v16 = vadd.f32 1e-05, %v1608_v15 }
 0xf9f   :  { %v1607_v14 = vpop.xlane.xlu1 %1606 }
 0xfa0   :  { %4308 = vrsqrt.f32 %v1610_v16  ;;  %v1609_v17 = vmul.f32 0.015625, %v1607_v14 }
 0xfa2   :  { %v1611_v18 = vadd.f32 1e-05, %v1609_v17 }
 0xfa4   :  { %4310 = vrsqrt.f32 %v1611_v18 }
 0xfaa   :  { %v4309_v23 = vpop.eup %4308 }
 0xfab   :  { %v1614_v24 = vmul.f32 %v4309_v23, %v1598_v45  ;;  %v1695_v45 = vrot.slane %v3385_v20, %v4527_v32 }
 0xfad   :  { %v1620_v19 = vmul.f32 %v1619_v22, %v1614_v24 }
 0xfae   :  { %v4311_v31 = vpop.eup %4310 }
 0xfaf   :  { %v4864_v33 = vadd.f32 %v3368_v30, %v1620_v19  ;;  %v1615_v35 = vmul.f32 %v4311_v31, %v1599_v49 }
 0xfb1   :  { %3421 = vmatmul.mubr.msk.f32.vlgmr.msra.gmra.mrb[12].mxu0 %vm106_vm0, %v4864_v33  ;;  %v1621_v36 = vmul.f32 %v1619_v22, %v1615_v35 }
 0xfb2   :  { %1774 = vmatprep.mubr.f32.mxu0 %v4382_v7 }
 0xfb3   :  { %v4869_v37 = vadd.f32 %v3368_v30, %v1621_v36 }
 0xfb5   :  { %3422 = vmatmul.mubr.msk.f32.gmra.mrb[14].mxu0 %vm106_vm0, %v4869_v37 }
0x1084   :  { %v1770_v40 = vpop.f32.mrb[12].mxu0 }
0x1085   :  { %v4877_v41 = vadd.f32 %v1770_v40, %v1691_v39  ;;  %v1772_v43 = vpop.f32.mrb[13].mxu0 }
0x1086   :  { %v1773_v44 = vadd.f32 %v1772_v43, %v1695_v45 }
0x1087   :  { %3766 = vmatprep.mubr.msk.f32.mxu0 %vm196_vm1, %v4877_v41 }
0x1088   :  { %v1776_v7 = vpop.f32.mrb[14].mxu0 }
0x1089   :  { %v4882_v46 = vadd.f32 %v1776_v7, %v1691_v39  ;;  %v1778_v47 = vpop.f32.mrb[15].mxu0 }
0x108a   :  { %v1779_v49 = vadd.f32 %v1778_v47, %v1695_v45 }
0x108b   :  { %v4886_v26 = vpack.i.bf16 %v4882_v46, %v4877_v41 }
0x108c   :  { %v4061_v50 = vpack.c.bf16 %v1779_v49, %v1773_v44  ;;  %v4888_v25 = vpack.i.bf16 %v1779_v49, %v1773_v44 }
0x108d   :  { %4239 = vrot.lane.b32.xlu1 %v4886_v26, %s4384_s21  ;;  %4234 = vrot.lane.b32.xlu0 %v4886_v26, %s4383_s0 }
0x108e   :  { %4062 = vmatprep.subr.bf16.mxu1 %v4061_v50 }
0x108f   :  { %4064 = vmatpush3.bf16.msra.mxu1 %v4061_v50 }
0x1091   :  { %1977 = vrot.lane.b32.xlu1 %v4877_v41, %s4385_s22  ;;  %1979 = vrot.lane.b32.xlu0 %v4882_v46, %s4385_s22 }
0x1095   :  { %4244 = vrot.lane.b32.xlu1 %v4886_v26, %s4387_s24  ;;  %2345 = vrot.lane.b32.xlu0 %v4877_v41, %s4386_s23 }
0x1099   :  { %2347 = vrot.lane.b32.xlu1 %v4882_v46, %s4386_s23 }
0x10ff   :  { %v4240_v52 = vpop.permute.xlu1 %4239  ;;  %v4235_v53 = vpop.permute.xlu0 %4234 }
0x1100   :  { %v4242_v55 = vunpack.i.h.bf16 %v4240_v52  ;;  %v4241_v56 = vunpack.i.l.bf16 %v4240_v52  ;;  %v4237_v57 = vunpack.i.h.bf16 %v4235_v53  ;;  %v4236_v58 = vunpack.i.l.bf16 %v4235_v53 }
0x1102   :  { %v4055_v42 = vpack.c.bf16 %v4237_v57, %v4236_v58  ;;  %v4065_v34 = vpack.c.bf16 %v4242_v55, %v4241_v56 }
0x1103   :  { %v1978_v51 = vpop.permute.xlu1 %1977  ;;  %v1980_v63 = vpop.permute.xlu0 %1979 }
0x1104   :  { %4057 = vmatprep.subr.msk.bf16.mxu0 %vm4546_vm2, %v4055_v42 }
0x1105   :  { %4060 = vmatpush3.bf16.xpose.msk.msra.mxu0 %vm4546_vm2, %v4055_v42 }
0x1106   :  { %4067 = vmatprep.subr.msk.bf16.mxu0 %vm4546_vm2, %v4065_v34 }
0x1107   :  { %v4245_v60 = vpop.permute.xlu1 %4244  ;;  %v2346_v2 = vpop.permute.xlu0 %2345 }
0x1108   :  { %v4247_v61 = vunpack.i.h.bf16 %v4245_v60  ;;  %v4246_v38 = vunpack.i.l.bf16 %v4245_v60 }
0x110a   :  { %v4083_v62 = vpack.c.bf16 %v4247_v61, %v4246_v38 }
0x110b   :  { %v2348_v3 = vpop.permute.xlu1 %2347 }
0x110c   :  { %3767 = vmatmul.mubr.msk.f32.vlgmr.msra.gmra.mrb[16].mxu0 %vm196_vm1, %v4882_v46 }
0x110d   :  { %4070 = vmatpush3.bf16.xpose.msk.msra.mxu0 %vm4546_vm2, %v4065_v34  ;;  %3780 = vmatprep.mubr.msk.f32.mxu0 %vm196_vm1, %v1978_v51 }
0x110e   :  { %4085 = vmatprep.subr.msk.bf16.mxu0 %vm4546_vm2, %v4083_v62 }
0x1114   :  { %3781 = vmatmul.mubr.msk.f32.vlgmr.msra.gmra.mrb[18].mxu0 %vm196_vm1, %v1980_v63 }
0x1115   :  { %4088 = vmatpush3.bf16.xpose.msk.msra.mxu0 %vm4546_vm2, %v4083_v62  ;;  %3808 = vmatprep.mubr.msk.f32.mxu0 %vm196_vm1, %v2346_v2 }
0x111c   :  { %3809 = vmatmul.mubr.msk.f32.vlgmr.msra.gmra.mrb[20].mxu0 %vm196_vm1, %v2348_v3 }
0x11df   :  { %v3768_v4 = vpop.f32.mrb[16].mxu0 }
0x11e0   :  { %v1871_v5 = vmul.f32 0.25, %v3768_v4  ;;  %v1861_v6 = vpop.f32.mrb[17].mxu0 }
0x11e1   :  { %v1870_v8 = vmul.f32 0.25, %v1861_v6 }
0x11e2   :  { %v1873_v11 = vadd.f32 %v4925_v9, %v1871_v5 }
0x11e3   :  { %v1872_v13 = vadd.f32 %v4931_v12, %v1870_v8 }
0x11e4   :  { %v1877_v10 = vsel %vm196_vm1, %v1873_v11, -inf }
0x11e5   :  { %1878 = vmax.xlane.f32.xlu1 %v1877_v10  ;;  %v1874_v15 = vsel %vm196_vm1, %v1872_v13, -inf }
0x11e6   :  { %1875 = vmax.xlane.f32.xlu0 %v1874_v15 }
0x11e7   :  { %v3782_v16 = vpop.f32.mrb[18].mxu0 }
0x11e8   :  { %v2059_v14 = vpop.f32.mrb[19].mxu0  ;;  %v2069_v17 = vmul.f32 0.25, %v3782_v16 }
0x11e9   :  { %v2068_v18 = vmul.f32 0.25, %v2059_v14 }
0x11ea   :  { %v2071_v24 = vadd.f32 %v4925_v9, %v2069_v17 }
0x11eb   :  { %v2070_v22 = vadd.f32 %v4931_v12, %v2068_v18 }
0x11ec   :  { %v2075_v31 = vsel %vm196_vm1, %v2071_v24, -inf }
0x11ed   :  { %v2072_v23 = vsel %vm196_vm1, %v2070_v22, -inf }
0x11ee   :  { %2073 = vmax.xlane.f32.xlu0 %v2072_v23 }
0x11ef   :  { %v3810_v30 = vpop.f32.mrb[20].mxu0 }
0x11f0   :  { %v2427_v19 = vpop.f32.mrb[21].mxu0  ;;  %v2437_v60 = vmul.f32 0.25, %v3810_v30 }
0x11f1   :  { %v2436_v34 = vmul.f32 0.25, %v2427_v19 }
0x11f2   :  { %2076 = vmax.xlane.f32.xlu0 %v2075_v31  ;;  %v2439_v62 = vadd.f32 %v4925_v9, %v2437_v60 }
0x11f3   :  { %v2438_v61 = vadd.f32 %v4931_v12, %v2436_v34 }
0x11f4   :  { %v2443_v63 = vsel %vm196_vm1, %v2439_v62, -inf }
0x11f5   :  { %v2440_v38 = vsel %vm196_vm1, %v2438_v61, -inf }
0x1272   :  { %v1879_v35 = vpop.xlane.xlu1 %1878 }
0x1273   :  { %v1881_v36 = vsub.f32 %v1873_v11, %v1879_v35  ;;  %v1876_v20 = vpop.xlane.xlu0 %1875 }
0x1274   :  { %v1880_v39 = vsub.f32 %v1872_v13, %v1876_v20 }
0x1275   :  { %v1884_v40 = vmul.f32 1.442695, %v1881_v36 }
0x1276   :  { %v1882_v43 = vmul.f32 1.442695, %v1880_v39 }
0x1277   :  { %4312 = vpow2.f32 %v1884_v40 }
0x1278   :  { %4314 = vpow2.f32 %v1882_v43 }
0x127b   :  { %v2074_v45 = vpop.xlane.xlu0 %2073 }
0x127c   :  { %v2078_v7 = vsub.f32 %v2070_v22, %v2074_v45 }
0x127e   :  { %v2080_v47 = vmul.f32 1.442695, %v2078_v7 }
0x127f   :  { %v2077_v44 = vpop.xlane.xlu0 %2076 }
0x1280   :  { %4316 = vpow2.f32 %v2080_v47  ;;  %v2079_v49 = vsub.f32 %v2071_v24, %v2077_v44  ;;  %v3388_v47 = vld [vmem:[%s5190_s4 + $0x50] sm:$0xff]  ;;  %v3389_v44 = vld [vmem:[%s5190_s4 + $0x58] sm:$0xff] }
0x1281   :  { %v4313_v50 = vpop.eup %4312 }
0x1282   :  { %v4315_v52 = vpop.eup %4314  ;;  %v2082_v53 = vmul.f32 1.442695, %v2079_v49  ;;  %v1889_v55 = vsel %vm196_vm1, %v4313_v50, 0.0  ;;  %v4075_v49 = vpack.c.bf16 %v3389_v44, %v3388_v47 }
0x1283   :  { %1890 = vadd.xlane.f32.xlu0 %v1889_v55  ;;  %v1886_v56 = vsel %vm196_vm1, %v4315_v52, 0.0 }
0x1284   :  { %4318 = vpow2.f32 %v2082_v53  ;;  %1887 = vadd.xlane.f32.xlu1 %v1886_v56 }
0x128a   :  { %v4317_v57 = vpop.eup %4316 }
0x128b   :  { %v2084_v58 = vsel %vm196_vm1, %v4317_v57, 0.0 }
0x128c   :  { %2085 = vadd.xlane.f32.xlu1 %v2084_v58 }
0x128e   :  { %v4319_v42 = vpop.eup %4318 }
0x128f   :  { %v2087_v51 = vsel %vm196_vm1, %v4319_v42, 0.0 }
0x1290   :  { %2088 = vadd.xlane.f32.xlu0 %v2087_v51 }
0x129d   :  { %4249 = vrot.lane.b32.xlu1 %v4888_v25, %s4385_s22 }
0x12a1   :  { %2632 = vrot.lane.b32.xlu1 %v4877_v41, %s4389_s26 }
0x12a5   :  { %2634 = vrot.lane.b32.xlu1 %v4882_v46, %s4389_s26 }
0x12a6   :  { %4254 = vrot.lane.b32.xlu0 %v4886_v26, %s4388_s25 }
0x12c5   :  { %2441 = vmax.xlane.f32.xlu0 %v2440_v38 }
0x12c9   :  { %2444 = vmax.xlane.f32.xlu1 %v2443_v63 }
0x12da   :  { %4259 = vrot.lane.b32.xlu1 %v4888_v25, %s4386_s23 }
0x1310   :  { %v1891_v41 = vpop.xlane.xlu0 %1890 }
0x1311   :  { %4320 = vrcp.f32 %v1891_v41  ;;  %v1888_v46 = vpop.xlane.xlu1 %1887 }
0x1312   :  { %4322 = vrcp.f32 %v1888_v46 }
0x1319   :  { %v2086_v26 = vpop.xlane.xlu1 %2085 }
0x131a   :  { %4324 = vrcp.f32 %v2086_v26 }
0x131b   :  { %v4321_v2 = vpop.eup %4320 }
0x131c   :  { %v4323_v3 = vpop.eup %4322  ;;  %v1895_v8 = vmul.f32 %v4321_v2, %v4313_v50  ;;  %v3386_v50 = vld [vmem:[%s5190_s4 + $0x40] sm:$0xff] }
0x131d   :  { %v4250_v4 = vpop.permute.xlu1 %4249  ;;  %v2089_v5 = vpop.xlane.xlu0 %2088  ;;  %v1894_v6 = vmul.f32 %v4323_v3, %v4315_v52  ;;  %v3387_v52 = vld [vmem:[%s5190_s4 + $0x48] sm:$0xff] }
0x131e   :  { %v4252_v11 = vunpack.i.h.bf16 %v4250_v4  ;;  %v4251_v13 = vunpack.i.l.bf16 %v4250_v4  ;;  %4326 = vrcp.f32 %v2089_v5  ;;  %v4079_v53 = vpack.c.bf16 %v3387_v52, %v3386_v50 }
0x131f   :  { %3773 = vmatprep.mubr.msk.f32.mxu1 %vm196_vm1, %v1894_v6 }
0x1320   :  { %v4071_v10 = vpack.c.bf16 %v4252_v11, %v4251_v13  ;;  %3774 = vmatmul.mubr.msk.f32.vlgmr.msra.gmra.mrb[14].mxu1 %vm196_vm1, %v1895_v8 }
0x1321   :  { %v2633_v15 = vpop.permute.xlu1 %2632  ;;  %v4255_v16 = vpop.permute.xlu0 %4254 }
0x1322   :  { %v4257_v14 = vunpack.i.h.bf16 %v4255_v16  ;;  %v4256_v17 = vunpack.i.l.bf16 %v4255_v16  ;;  %4072 = vmatprep.subr.bf16.mxu1 %v4071_v10  ;;  %3829 = vmatprep.mubr.msk.f32.mxu0 %vm196_vm1, %v2633_v15 }
0x1323   :  { %4074 = vmatpush3.bf16.msra.mxu1 %v4071_v10 }
0x1324   :  { %v4325_v18 = vpop.eup %4324  ;;  %v4097_v22 = vpack.c.bf16 %v4257_v14, %v4256_v17  ;;  %4076 = vmatprep.subr.bf16.mxu1 %v4075_v49 }
0x1325   :  { %v2092_v23 = vmul.f32 %v4325_v18, %v4317_v57  ;;  %v2635_v19 = vpop.permute.xlu1 %2634 }
0x1326   :  { %4099 = vmatprep.subr.msk.bf16.mxu0 %vm4546_vm2, %v4097_v22 }
0x1327   :  { %3787 = vmatprep.mubr.msk.f32.mxu1 %vm196_vm1, %v2092_v23  ;;  %4102 = vmatpush3.bf16.xpose.msk.msra.mxu0 %vm4546_vm2, %v4097_v22 }
0x1328   :  { %v4327_v24 = vpop.eup %4326 }
0x1329   :  { %v2093_v30 = vmul.f32 %v4327_v24, %v4319_v42 }
0x132b   :  { %3788 = vmatmul.mubr.msk.f32.vlgmr.msra.gmra.mrb[16].mxu1 %vm196_vm1, %v2093_v30 }
0x132c   :  { %4078 = vmatpush3.bf16.msra.mxu1 %v4075_v49 }
0x132d   :  { %4080 = vmatprep.subr.bf16.mxu1 %v4079_v53 }
0x132e   :  { %3830 = vmatmul.mubr.msk.f32.vlgmr.msra.gmra.mrb[22].mxu0 %vm196_vm1, %v2635_v19 }
0x1352   :  { %v2442_v31 = vpop.xlane.xlu0 %2441 }
0x1353   :  { %v2446_v35 = vsub.f32 %v2438_v61, %v2442_v31 }
0x1355   :  { %v2448_v36 = vmul.f32 1.442695, %v2446_v35 }
0x1356   :  { %v2445_v20 = vpop.xlane.xlu1 %2444 }
0x1357   :  { %4328 = vpow2.f32 %v2448_v36  ;;  %v2447_v39 = vsub.f32 %v2439_v62, %v2445_v20 }
0x1359   :  { %v2450_v40 = vmul.f32 1.442695, %v2447_v39  ;;  %v3392_v39 = vld [vmem:[%s5190_s4 + $0x70] sm:$0xff] }
0x135a   :  { %v4260_v58 = vpop.permute.xlu1 %4259 }
0x135b   :  { %4330 = vpow2.f32 %v2450_v40  ;;  %v4262_v51 = vunpack.i.h.bf16 %v4260_v58  ;;  %v4261_v34 = vunpack.i.l.bf16 %v4260_v58  ;;  %v3393_v40 = vld [vmem:[%s5190_s4 + $0x78] sm:$0xff] }
0x135d   :  { %v4089_v38 = vpack.c.bf16 %v4262_v51, %v4261_v34 }
0x1361   :  { %v4329_v43 = vpop.eup %4328 }
0x1362   :  { %v2452_v45 = vsel %vm196_vm1, %v4329_v43, 0.0 }
0x1363   :  { %2453 = vadd.xlane.f32.xlu0 %v2452_v45 }
0x1365   :  { %v4331_v48 = vpop.eup %4330 }
0x1366   :  { %v2455_v7 = vsel %vm196_vm1, %v4331_v48, 0.0 }
0x1367   :  { %2456 = vadd.xlane.f32.xlu0 %v2455_v7 }
0x13f0   :  { %v2454_v57 = vpop.xlane.xlu0 %2453 }
0x13f1   :  { %4332 = vrcp.f32 %v2454_v57 }
0x13f3   :  { %v3775_v55 = vpop.f32.mrb[14].mxu1 }
0x13f4   :  { %v1968_v56 = vpop.f32.mrb[15].mxu1  ;;  %v2457_v42 = vpop.xlane.xlu0 %2456 }
0x13f5   :  { %4334 = vrcp.f32 %v2457_v42 }
0x13fb   :  { %v4333_v26 = vpop.eup %4332 }
0x13fc   :  { %v2460_v6 = vmul.f32 %v4333_v26, %v4329_v43 }
0x13fe   :  { %v3789_v60 = vpop.f32.mrb[16].mxu1 }
0x13ff   :  { %v2174_v61 = vpop.f32.mrb[17].mxu1  ;;  %v4335_v5 = vpop.eup %4334 }
0x1400   :  { %3794 = vmatprep.mubr.msk.f32.mxu1 %vm196_vm1, %v2174_v61  ;;  %v2461_v8 = vmul.f32 %v4335_v5, %v4331_v48  ;;  %v4107_v48 = vpack.c.bf16 %v3393_v40, %v3392_v39 }
0x1401   :  { %3795 = vmatmul.mubr.msk.f32.vlgmr.msra.gmra.mrb[18].mxu1 %vm196_vm1, %v3789_v60  ;;  %v3831_v62 = vpop.f32.mrb[22].mxu0 }
0x1402   :  { %4082 = vmatpush3.bf16.msra.mxu1 %v4079_v53  ;;  %3801 = vmatprep.mubr.msk.f32.mxu1 %vm196_vm1, %v1968_v56  ;;  %v2714_v63 = vpop.f32.mrb[23].mxu0  ;;  %v2724_v41 = vmul.f32 0.25, %v3831_v62  ;;  %v5017_v53 = vld [vmem:[%s5194_s8 + $0x10] sm:$0xff] }
0x1403   :  { %4090 = vmatprep.subr.bf16.mxu1 %v4089_v38  ;;  %v2723_v46 = vmul.f32 0.25, %v2714_v63 }
0x1404   :  { %v2726_v4 = vadd.f32 %v4925_v9, %v2724_v41  ;;  %v3391_v9 = vld [vmem:[%s5190_s4 + $0x68] sm:$0xff] }
0x1405   :  { %v2725_v2 = vadd.f32 %v4931_v12, %v2723_v46  ;;  %v3390_v12 = vld [vmem:[%s5190_s4 + $0x60] sm:$0xff] }
0x1406   :  { %v2730_v11 = vsel %vm196_vm1, %v2726_v4, -inf  ;;  %v4093_v13 = vpack.c.bf16 %v3391_v9, %v3390_v12  ;;  %v2956_v12 = vrot.slane %v5017_v53, %v4527_v32 }
0x1407   :  { %v2727_v3 = vsel %vm196_vm1, %v2725_v2, -inf }
0x1408   :  { %2728 = vmax.xlane.f32.xlu0 %v2727_v3 }
0x1409   :  { %3802 = vmatmul.mubr.msk.f32.vlgmr.msra.gmra.mrb[18].mxu1 %vm196_vm1, %v3775_v55  ;;  %v2924_v55 = vrot.slane %v5017_v53, %v4520_v29 }
0x140a   :  { %4092 = vmatpush3.bf16.msra.mxu1 %v4089_v38  ;;  %3815 = vmatprep.mubr.msk.f32.mxu1 %vm196_vm1, %v2460_v6 }
0x140b   :  { %4094 = vmatprep.subr.bf16.mxu1 %v4093_v13 }
0x140c   :  { %2731 = vmax.xlane.f32.xlu0 %v2730_v11 }
0x140d   :  { %3816 = vmatmul.mubr.msk.f32.vlgmr.msra.gmra.mrb[20].mxu1 %vm196_vm1, %v2461_v8 }
0x140e   :  { %4096 = vmatpush3.bf16.msra.mxu1 %v4093_v13 }
0x1495   :  { %v2729_v10 = vpop.xlane.xlu0 %2728 }
0x1496   :  { %v2733_v15 = vsub.f32 %v2725_v2, %v2729_v10  ;;  %v2962_v10 = vrot.slane %v5017_v53, %v1372_v54 }
0x1498   :  { %v2735_v17 = vmul.f32 1.442695, %v2733_v15 }
0x1499   :  { %v2732_v16 = vpop.xlane.xlu0 %2731 }
0x149a   :  { %v2734_v14 = vsub.f32 %v2726_v4, %v2732_v16  ;;  %v2968_v16 = vrot.slane %v5017_v53, %v1378_v59 }
0x149c   :  { %v2737_v18 = vmul.f32 1.442695, %v2734_v14 }
0x149e   :  { %4336 = vpow2.f32 %v2737_v18 }
0x149f   :  { %4338 = vpow2.f32 %v2735_v17 }
0x14a8   :  { %v4337_v22 = vpop.eup %4336 }
0x14a9   :  { %v2742_v23 = vsel %vm196_vm1, %v4337_v22, 0.0  ;;  %v4339_v24 = vpop.eup %4338 }
0x14aa   :  { %2743 = vadd.xlane.f32.xlu0 %v2742_v23  ;;  %v2739_v30 = vsel %vm196_vm1, %v4339_v24, 0.0 }
0x14ae   :  { %2740 = vadd.xlane.f32.xlu0 %v2739_v30 }
0x14c4   :  { %4264 = vrot.lane.b32.xlu0 %v4888_v25, %s4389_s26 }
0x14e0   :  { %v3817_v19 = vpop.f32.mrb[20].mxu1 }
0x14e1   :  { %v2540_v31 = vpop.f32.mrb[21].mxu1 }
0x14e2   :  { %3822 = vmatprep.mubr.msk.f32.mxu1 %vm196_vm1, %v2540_v31 }
0x14e3   :  { %3823 = vmatmul.mubr.msk.f32.vlgmr.msra.gmra.mrb[18].mxu1 %vm196_vm1, %v3817_v19 }
0x1537   :  { %v2744_v35 = vpop.xlane.xlu0 %2743 }
0x1538   :  { %4340 = vrcp.f32 %v2744_v35 }
0x153b   :  { %v2741_v36 = vpop.xlane.xlu0 %2740 }
0x153c   :  { %4342 = vrcp.f32 %v2741_v36 }
0x153f   :  { %v4265_v20 = vpop.permute.xlu0 %4264 }
0x1540   :  { %v4267_v25 = vunpack.i.h.bf16 %v4265_v20  ;;  %v4266_v43 = vunpack.i.l.bf16 %v4265_v20 }
0x1542   :  { %v4103_v45 = vpack.c.bf16 %v4267_v25, %v4266_v43  ;;  %v4341_v7 = vpop.eup %4340 }
0x1543   :  { %v2748_v49 = vmul.f32 %v4341_v7, %v4337_v22 }
0x1544   :  { %4104 = vmatprep.subr.bf16.mxu1 %v4103_v45 }
0x1545   :  { %4106 = vmatpush3.bf16.msra.mxu1 %v4103_v45  ;;  %v3394_v45 = vld [vmem:[%s5191_s5 + $0x40] sm:$0xff] }
0x1546   :  { %v4343_v47 = vpop.eup %4342  ;;  %4108 = vmatprep.subr.bf16.mxu1 %v4107_v48 }
0x1547   :  { %v2747_v44 = vmul.f32 %v4343_v47, %v4339_v24  ;;  %v3396_v47 = vld [vmem:[%s5191_s5 + $0x50] sm:$0xff] }
0x1549   :  { %3836 = vmatprep.mubr.msk.f32.mxu1 %vm196_vm1, %v2747_v44  ;;  %v3397_v44 = vld [vmem:[%s5191_s5 + $0x58] sm:$0xff] }
0x154a   :  { %3837 = vmatmul.mubr.msk.f32.vlgmr.msra.gmra.mrb[22].mxu1 %vm196_vm1, %v2748_v49  ;;  %v4115_v49 = vpack.c.bf16 %v3397_v44, %v3396_v47 }
0x154b   :  { %4110 = vmatpush3.bf16.msra.mxu1 %v4107_v48  ;;  %v3395_v48 = vld [vmem:[%s5191_s5 + $0x48] sm:$0xff] }
0x154c   :  { %v4111_v7 = vpack.c.bf16 %v3395_v48, %v3394_v45 }
0x154e   :  { %4112 = vmatprep.subr.bf16.mxu0 %v4111_v7 }
0x154f   :  { %4114 = vmatpush3.bf16.msra.mxu0 %v4111_v7 }
0x1550   :  { %4116 = vmatprep.subr.bf16.mxu0 %v4115_v49 }
0x1553   :  { %4118 = vmatpush3.bf16.msra.mxu0 %v4115_v49 }
0x161d   :  { %v3838_v50 = vpop.f32.mrb[22].mxu1 }
0x161e   :  { %v2827_v52 = vpop.f32.mrb[23].mxu1 }
0x161f   :  { %3843 = vmatprep.mubr.msk.f32.mxu1 %vm196_vm1, %v2827_v52  ;;  %v3399_v52 = vld [vmem:[%s5191_s5 + $0x68] sm:$0xff] }
0x1620   :  { %3844 = vmatmul.mubr.msk.f32.vlgmr.msra.gmra.mrb[18].mxu1 %vm196_vm1, %v3838_v50  ;;  %v3398_v50 = vld [vmem:[%s5191_s5 + $0x60] sm:$0xff] }
0x16f3   :  { %v3845_v56 = vpop.f32.mrb[18].mxu1 }
0x16f4   :  { %v2920_v57 = vadd.f32 %v3845_v56, %v4869_v37  ;;  %v2908_v58 = vpop.f32.mrb[19].mxu1  ;;  %v3400_v56 = vld [vmem:[%s5191_s5 + $0x70] sm:$0xff] }
0x16f5   :  { %v2919_v42 = vadd.f32 %v2908_v58, %v4864_v33 }
0x16f6   :  { %v2926_v51 = vadd.f32 %v2924_v55, %v2920_v57  ;;  %v3401_v57 = vld [vmem:[%s5191_s5 + $0x78] sm:$0xff] }
0x16f7   :  { %v2925_v34 = vadd.f32 %v2924_v55, %v2919_v42  ;;  %v4119_v55 = vpack.c.bf16 %v3399_v52, %v3398_v50  ;;  %v4123_v58 = vpack.c.bf16 %v3401_v57, %v3400_v56  ;;  %v3403_v42 = vld [vmem:[%s5193_s7 + $0x80] sm:$0xff] }
0x16f8   :  { %v2930_v60 = vsel %vm106_vm0, %v2926_v51, 0.0 }
0x16f9   :  { %2931 = vadd.xlane.f32.xlu0 %v2930_v60  ;;  %v2927_v61 = vsel %vm106_vm0, %v2925_v34, 0.0  ;;  %4120 = vmatprep.subr.bf16.mxu0 %v4119_v55 }
0x16fa   :  { %2928 = vadd.xlane.f32.xlu1 %v2927_v61  ;;  %4122 = vmatpush3.bf16.msra.mxu0 %v4119_v55  ;;  %v3406_v61 = vld [vmem:[%s5193_s7 + $0x98] sm:$0xff] }
0x16fb   :  { %4124 = vmatprep.subr.bf16.mxu0 %v4123_v58 }
0x16fe   :  { %4126 = vmatpush3.bf16.msra.mxu0 %v4123_v58 }
0x1786   :  { %v2932_v38 = vpop.xlane.xlu0 %2931 }
0x1787   :  { %v2934_v62 = vmul.f32 0.015625, %v2932_v38  ;;  %v2929_v63 = vpop.xlane.xlu1 %2928 }
0x1788   :  { %v2933_v41 = vmul.f32 0.015625, %v2929_v63  ;;  %v3408_v63 = vld [vmem:[%s5193_s7 + $0xa8] sm:$0xff] }
0x1789   :  { %v2936_v46 = vsub.f32 %v2926_v51, %v2934_v62  ;;  %v3404_v51 = vld [vmem:[%s5193_s7 + $0x88] sm:$0xff]  ;;  %v3407_v62 = vld [vmem:[%s5193_s7 + $0xa0] sm:$0xff] }
0x178a   :  { %v2935_v29 = vsub.f32 %v2925_v34, %v2933_v41  ;;  %v3405_v34 = vld [vmem:[%s5193_s7 + $0x90] sm:$0xff]  ;;  %v4127_v60 = vpack.c.bf16 %v3404_v51, %v3403_v42  ;;  %v4135_v41 = vpack.c.bf16 %v3408_v63, %v3407_v62  ;;  %v3218_v62 = vld [vmem:[%s5195_s9 + $0x8] sm:$0xff] }
0x178b   :  { %v2938_v2 = vmul.f32 %v2936_v46, %v2936_v46  ;;  %v4131_v38 = vpack.c.bf16 %v3406_v61, %v3405_v34 }
0x178c   :  { %v2937_v26 = vmul.f32 %v2935_v29, %v2935_v29  ;;  %4128 = vmatprep.subr.bf16.mxu1 %v4127_v60 }
0x178d   :  { %v2942_v33 = vsel %vm106_vm0, %v2938_v2, 0.0  ;;  %4130 = vmatpush3.bf16.msra.mxu1 %v4127_v60  ;;  %v3412_v2 = vld [vmem:[%s5193_s7 + $0xc8] sm:$0xff] }
0x178e   :  { %v2939_v37 = vsel %vm106_vm0, %v2937_v26, 0.0  ;;  %4132 = vmatprep.subr.bf16.mxu1 %v4131_v38 }
0x178f   :  { %2940 = vadd.xlane.f32.xlu1 %v2939_v37  ;;  %v3411_v37 = vld [vmem:[%s5193_s7 + $0xc0] sm:$0xff] }
0x1791   :  { %4134 = vmatpush3.bf16.msra.mxu1 %v4131_v38  ;;  %v3217_v38 = vld [vmem:[%s5195_s9] sm:$0xff] }
0x1792   :  { %4136 = vmatprep.subr.bf16.mxu1 %v4135_v41  ;;  %v4159_v63 = vpack.c.bf16 %v3218_v62, %v3217_v38 }
0x1793   :  { %2943 = vadd.xlane.f32.xlu1 %v2942_v33  ;;  %v4143_v33 = vpack.c.bf16 %v3412_v2, %v3411_v37  ;;  %v3222_v37 = vld [vmem:[%s5195_s9 + $0x28] sm:$0xff] }
0x1794   :  { %4160 = vmatprep.subr.bf16.mxu0 %v4159_v63 }
0x1795   :  { %4138 = vmatpush3.bf16.msra.mxu1 %v4135_v41  ;;  %v3219_v41 = vld [vmem:[%s5195_s9 + $0x10] sm:$0xff] }
0x181c   :  { %v2941_v3 = vpop.xlane.xlu1 %2940 }
0x181d   :  { %v2945_v4 = vmul.f32 0.015625, %v2941_v3  ;;  %v3413_v3 = vld [vmem:[%s5193_s7 + $0xd0] sm:$0xff] }
0x181f   :  { %v2947_v5 = vadd.f32 1e-05, %v2945_v4  ;;  %v3414_v4 = vld [vmem:[%s5193_s7 + $0xd8] sm:$0xff] }
0x1820   :  { %v2944_v6 = vpop.xlane.xlu1 %2943 }
0x1821   :  { %4344 = vrsqrt.f32 %v2947_v5  ;;  %v2946_v8 = vmul.f32 0.015625, %v2944_v6  ;;  %v4147_v5 = vpack.c.bf16 %v3414_v4, %v3413_v3  ;;  %v3415_v6 = vld [vmem:[%s5193_s7 + $0xe0] sm:$0xff]  ;;  %v3224_v3 = vld [vmem:[%s5195_s9 + $0x38] sm:$0xff] }
0x1823   :  { %v2948_v11 = vadd.f32 1e-05, %v2946_v8  ;;  %v3416_v8 = vld [vmem:[%s5193_s7 + $0xe8] sm:$0xff] }
0x1825   :  { %4346 = vrsqrt.f32 %v2948_v11  ;;  %v4151_v11 = vpack.c.bf16 %v3416_v8, %v3415_v6 }
0x182b   :  { %v4345_v9 = vpop.eup %4344 }
0x182c   :  { %v2951_v13 = vmul.f32 %v4345_v9, %v2935_v29  ;;  %v3410_v29 = vld [vmem:[%s5193_s7 + $0xb8] sm:$0xff] }
0x182e   :  { %v2957_v15 = vmul.f32 %v2956_v12, %v2951_v13 }
0x182f   :  { %v4347_v14 = vpop.eup %4346 }
0x1830   :  { %v2963_v17 = vadd.f32 %v2962_v10, %v2957_v15  ;;  %v2952_v18 = vmul.f32 %v4347_v14, %v2936_v46  ;;  %v3409_v46 = vld [vmem:[%s5193_s7 + $0xb0] sm:$0xff]  ;;  %v3000_v14 = vrot.slane %v5017_v53, %v1410_v0 }
0x1831   :  { %v4139_v26 = vpack.c.bf16 %v3410_v29, %v3409_v46  ;;  %v3417_v0 = vld [vmem:[%s5193_s7 + $0xf0] sm:$0xff]  ;;  %v3220_v46 = vld [vmem:[%s5195_s9 + $0x18] sm:$0xff] }
0x1832   :  { %v2969_v22 = vadd.f32 %v2968_v16, %v2963_v17  ;;  %v2958_v23 = vmul.f32 %v2956_v12, %v2952_v18  ;;  %v4163_v29 = vpack.c.bf16 %v3220_v46, %v3219_v41 }
0x1833   :  { %4140 = vmatprep.subr.bf16.mxu1 %v4139_v26 }
0x1834   :  { %v2971_v24 = vsel %vm106_vm0, %v2969_v22, 0.0  ;;  %v2964_v30 = vadd.f32 %v2962_v10, %v2958_v23  ;;  %4142 = vmatpush3.bf16.msra.mxu1 %v4139_v26  ;;  %v3221_v26 = vld [vmem:[%s5195_s9 + $0x20] sm:$0xff] }
0x1835   :  { %2972 = vadd.xlane.f32.xlu1 %v2971_v24  ;;  %4144 = vmatprep.subr.bf16.mxu1 %v4143_v33  ;;  %v4167_v2 = vpack.c.bf16 %v3222_v37, %v3221_v26 }
0x1836   :  { %v2970_v32 = vadd.f32 %v2968_v16, %v2964_v30 }
0x1838   :  { %v2974_v19 = vsel %vm106_vm0, %v2970_v32, 0.0  ;;  %4146 = vmatpush3.bf16.msra.mxu1 %v4143_v33  ;;  %v3223_v33 = vld [vmem:[%s5195_s9 + $0x30] sm:$0xff] }
0x1839   :  { %2975 = vadd.xlane.f32.xlu1 %v2974_v19  ;;  %4148 = vmatprep.subr.bf16.mxu1 %v4147_v5  ;;  %v4171_v4 = vpack.c.bf16 %v3224_v3, %v3223_v33 }
0x183c   :  { %4150 = vmatpush3.bf16.msra.mxu1 %v4147_v5 }
0x183d   :  { %4152 = vmatprep.subr.bf16.mxu1 %v4151_v11 }
0x1840   :  { %4154 = vmatpush3.bf16.msra.mxu1 %v4151_v11 }
0x18c2   :  { %v2973_v31 = vpop.xlane.xlu1 %2972 }
0x18c3   :  { %v2977_v54 = vmul.f32 0.015625, %v2973_v31 }
0x18c5   :  { %v5037_v35 = vsub.f32 %v2969_v22, %v2977_v54  ;;  %v3006_v22 = vrot.slane %v5017_v53, %v1416_v1  ;;  %v3418_v54 = vld [vmem:[%s5193_s7 + $0xf8] sm:$0xff] }
0x18c6   :  { %v2976_v36 = vpop.xlane.xlu1 %2975  ;;  %v4155_v1 = vpack.c.bf16 %v3418_v54, %v3417_v0 }
0x18c7   :  { %v2978_v20 = vmul.f32 0.015625, %v2976_v36  ;;  %v2981_v59 = vmul.f32 %v5037_v35, %v5037_v35 }
0x18c8   :  { %4156 = vmatprep.subr.bf16.mxu1 %v4155_v1 }
0x18c9   :  { %v5041_v39 = vsub.f32 %v2970_v32, %v2978_v20  ;;  %v2983_v40 = vsel %vm106_vm0, %v2981_v59, 0.0  ;;  %4158 = vmatpush3.bf16.msra.mxu1 %v4155_v1 }
0x18ca   :  { %2984 = vadd.xlane.f32.xlu1 %v2983_v40 }
0x18cb   :  { %v2982_v25 = vmul.f32 %v5041_v39, %v5041_v39 }
0x18cd   :  { %v2986_v43 = vsel %vm106_vm0, %v2982_v25, 0.0 }
0x18ce   :  { %2987 = vadd.xlane.f32.xlu0 %v2986_v43  ;;  %v3101_v43 = vrot.slane %v5017_v53, %v1511_v27 }
0x1957   :  { %v2985_v12 = vpop.xlane.xlu1 %2984 }
0x1958   :  { %v2989_v9 = vmul.f32 0.015625, %v2985_v12 }
0x195a   :  { %v2991_v13 = vadd.f32 1e-05, %v2989_v9 }
0x195b   :  { %v2988_v10 = vpop.xlane.xlu0 %2987 }
0x195c   :  { %4348 = vrsqrt.f32 %v2991_v13  ;;  %v2990_v15 = vmul.f32 0.015625, %v2988_v10  ;;  %v3208_v13 = vrot.slane %v5017_v53, %v1618_v21 }
0x195e   :  { %v2992_v16 = vadd.f32 1e-05, %v2990_v15 }
0x1960   :  { %4350 = vrsqrt.f32 %v2992_v16 }
0x1966   :  { %v4349_v17 = vpop.eup %4348 }
0x1967   :  { %v2995_v18 = vmul.f32 %v4349_v17, %v5037_v35  ;;  %v3455_v35 = vld [vmem:[%s5192_s6 + $0x1] ss:$0 sm:$0xff]  ;;  %v3458_v17 = vld [vmem:[%s5194_s8 + $0x18] ss:$0 sm:$0xff]  ;;  %s4358_s8 = scalar_lea.vmem %s3321_s15, 256 }
0x1968   :  { %p4359_p0 = scmp.ne.s32.totalorder %s3321_s15, %s4358_s8  ;;  %p4364_p2 = scmp.lt.s32.totalorder %s4358_s8, %s4358_s8 }
0x1969   :  { %v3001_v23 = vmul.f32 %v3000_v14, %v2995_v18 }
0x196a   :  { %v4351_v24 = vpop.eup %4350  ;;  %p4365_p3 = por %p4364_p2, %p4363_p1 }
0x196b   :  { %v2996_v30 = vmul.f32 %v4351_v24, %v5041_v39  ;;  %v3007_v32 = vadd.f32 %v3006_v22, %v3001_v23 }
0x196c   :  { %p4366_p4 = pnand %p4365_p3, %p4359_p0 }
0x196d   :  { %v3002_v19 = vmul.f32 %v3000_v14, %v2996_v30  ;;  %3862 = vmatprep.mubr.msk.f32.mxu0 %vm106_vm0, %v3007_v32 }
0x196f   :  { %v3008_v31 = vadd.f32 %v3006_v22, %v3002_v19 }
0x1971   :  { %3863 = vmatmul.mubr.msk.f32.vlgmr.msra.gmra.mrb[24].mxu0 %vm106_vm0, %v3008_v31 }
0x1972   :  { %4162 = vmatpush3.bf16.msra.mxu0 %v4159_v63 }
0x1973   :  { %4164 = vmatprep.subr.bf16.mxu0 %v4163_v29 }
0x1976   :  { %4166 = vmatpush3.bf16.msra.mxu0 %v4163_v29 }
0x1977   :  { %4168 = vmatprep.subr.bf16.mxu0 %v4167_v2 }
0x197a   :  { %4170 = vmatpush3.bf16.msra.mxu0 %v4167_v2 }
0x197b   :  { %4172 = vmatprep.subr.bf16.mxu0 %v4171_v4 }
0x197e   :  { %4174 = vmatpush3.bf16.msra.mxu0 %v4171_v4 }
0x1a44   :  { %v3864_v36 = vpop.f32.mrb[24].mxu0 }
0x1a45   :  { %v3093_v20 = vadd.f32 %v3864_v36, %v3455_v35  ;;  %v3087_v59 = vpop.f32.mrb[25].mxu0 }
0x1a46   :  { %v3088_v39 = vadd.f32 %v3455_v35, %v3087_v59 }
0x1a47   :  { %v3097_v25 = vmax.f32 %v3093_v20, 0.0 }
0x1a48   :  { %v3096_v40 = vmax.f32 %v3088_v39, 0.0 }
0x1a4a   :  { %3897 = vmatprep.mubr.f32.mxu1 %v3096_v40 }
0x1a4b   :  { %3898 = vmatmul.mubr.f32.vlgmr.msra.gmra.mrb[24].mxu1 %v3097_v25 }
0x1b1e   :  { %v3899_v45 = vpop.f32.mrb[24].mxu1 }
0x1b1f   :  { %v3174_v48 = vadd.f32 %v3899_v45, %v3101_v43  ;;  %v3168_v7 = vpop.f32.mrb[25].mxu1 }
0x1b20   :  { %v3169_v47 = vadd.f32 %v3168_v7, %v3101_v43 }
0x1b21   :  { %v3178_v44 = vadd.f32 %v3174_v48, %v3008_v31 }
0x1b22   :  { %v3177_v49 = vadd.f32 %v3169_v47, %v3007_v32 }
0x1b23   :  { %v3182_v50 = vsel %vm106_vm0, %v3178_v44, 0.0 }
0x1b24   :  { %3183 = vadd.xlane.f32.xlu0 %v3182_v50  ;;  %v3179_v52 = vsel %vm106_vm0, %v3177_v49, 0.0 }
0x1b25   :  { %3180 = vadd.xlane.f32.xlu1 %v3179_v52 }
0x1bb1   :  { %v3184_v55 = vpop.xlane.xlu0 %3183 }
0x1bb2   :  { %v3186_v56 = vmul.f32 0.015625, %v3184_v55  ;;  %v3181_v57 = vpop.xlane.xlu1 %3180 }
0x1bb3   :  { %v3185_v58 = vmul.f32 0.015625, %v3181_v57 }
0x1bb4   :  { %v3188_v42 = vsub.f32 %v3178_v44, %v3186_v56 }
0x1bb5   :  { %v3187_v51 = vsub.f32 %v3177_v49, %v3185_v58 }
0x1bb6   :  { %v3190_v34 = vmul.f32 %v3188_v42, %v3188_v42 }
0x1bb7   :  { %v3189_v27 = vmul.f32 %v3187_v51, %v3187_v51 }
0x1bb8   :  { %v3194_v60 = vsel %vm106_vm0, %v3190_v34, 0.0 }
0x1bb9   :  { %3195 = vadd.xlane.f32.xlu0 %v3194_v60  ;;  %v3191_v61 = vsel %vm106_vm0, %v3189_v27, 0.0 }
0x1bba   :  { %3192 = vadd.xlane.f32.xlu1 %v3191_v61 }
0x1c46   :  { %v3196_v5 = vpop.xlane.xlu0 %3195 }
0x1c47   :  { %v3198_v6 = vmul.f32 0.015625, %v3196_v5  ;;  %v3193_v8 = vpop.xlane.xlu1 %3192 }
0x1c48   :  { %v3197_v11 = vmul.f32 0.015625, %v3193_v8 }
0x1c49   :  { %v3200_v12 = vadd.f32 1e-05, %v3198_v6 }
0x1c4a   :  { %v3199_v9 = vadd.f32 1e-05, %v3197_v11 }
0x1c4b   :  { %4352 = vrsqrt.f32 %v3200_v12 }
0x1c4c   :  { %4354 = vrsqrt.f32 %v3199_v9 }
0x1c55   :  { %v4353_v10 = vpop.eup %4352 }
0x1c56   :  { %v4355_v15 = vpop.eup %4354  ;;  %v3204_v16 = vmul.f32 %v4353_v10, %v3188_v42 }
0x1c57   :  { %v3203_v14 = vmul.f32 %v4355_v15, %v3187_v51 }
0x1c58   :  { %v3210_v18 = vmul.f32 %v3208_v13, %v3204_v16 }
0x1c59   :  { %v3209_v22 = vmul.f32 %v3208_v13, %v3203_v14 }
0x1c5a   :  { %v3216_v24 = vadd.f32 %v3458_v17, %v3210_v18 }
0x1c5b   :  { %v3215_v23 = vadd.f32 %v3458_v17, %v3209_v22 }
0x1c5d   :  { %3916 = vmatprep.mubr.msk.f32.mxu0 %vm106_vm0, %v3215_v23 }
0x1c5e   :  { %3917 = vmatmul.mubr.msk.f32.vlgmr.msra.gmra.mrb[26].mxu0 %vm106_vm0, %v3216_v24 }
0x1d31   :  { %v3918_v21 = vpop.f32.mrb[26].mxu0 }
0x1d32   :  { %v3310_v53 = vadd.f32 %v3918_v21, %v3459_v28  ;;  %v3304_v30 = vpop.f32.mrb[27].mxu0 }
0x1d33   :  { %v3305_v32 = vadd.f32 %v3459_v28, %v3304_v30 }
0x1d34   :  { %3314 = vst [vmem:[#allocation2 + $0x8] sm:$0xff] %v3310_v53 }
0x1d35   :  { %3313 = vst [vmem:[#allocation2] sm:$0xff] %v3305_v32 }
0x1d36   :  { %4369 = shalt.err (!%p4366_p4)
}
0x1d37   :  { %s4370_s10 = scalar_lea.hbm %s5197_s11, 256 }
0x1d38   :  { %p4371_p5 = scmp.ne.s32.totalorder %s5197_s11, %s4370_s10  ;;  %p4374_p6 = scmp.lt.u32.totalorder %s4370_s10, %s5197_s11 }
0x1d3a   :  { %p4376_p7 = pnand %p4374_p6, %p4371_p5 }
0x1d3c   :  { %4379 = shalt.err (!%p4376_p7)
}
0x1d3d   :  { %s4391_s6 = smov 128   ;;  %s4392_s7 = smov 8  }
0x1d3e   :  { %3326 = dma.vmem_to_hbm [thread:$0]  %s3321_s15, 256, %s5197_s11, [#allocation3], %s4391_s6, %s4391_s6, %s4392_s7  }
0x1d3f   :  { %4380 = dma.done.wait [#allocation3], 256  }
0x1d40   :  { %4381 = vsyncadd [#allocation3], 4294967040 }
0x1d41   :  { %3330 = vsyncpa [#allocation3], 1 }

</bundles_post_ra>
